<compile_context>
chip_gen: v7x
topology: tpu7x:2x2x1
jax: 0.10.0
libtpu: 0.0.40
codegen_flags: <defaults>
</compile_context>

<pallas_src>
import functools

import numpy as np

import jax
import jax.numpy as jnp
from jax import lax
from jax.experimental import pallas as pl
from jax.experimental.pallas import tpu as pltpu

EPS = 1e-5  # PyTorch nn.LayerNorm default
BF16 = jnp.bfloat16

_BUFFERED = getattr(pl, "Buffered", None)


def _round_up(x, m):
    return ((x + m - 1) // m) * m


def _vmem_capacity_bytes():
    try:
        info = pltpu.get_tpu_info()
        cap = getattr(info, "vmem_capacity_bytes", None)
        if cap:
            return int(cap)
    except Exception:
        pass
    return None


def _default_vmem_limit_bytes():
    cap = _vmem_capacity_bytes()
    if cap:
        return min(64 << 20, cap * 3 // 4)
    return 32 << 20


def _vmem_limit_for(need_bytes):
    # Derive the scoped-VMEM limit from the actual per-call buffer sizes
    # (+50% slack), capped just below physical capacity.
    limit = max(32 << 20, int(need_bytes * 1.5))
    cap = _vmem_capacity_bytes()
    hard = (cap - (4 << 20)) if cap else (96 << 20)
    return max(32 << 20, min(limit, hard))


def _bf16_act_supported():
    # v6e / v7x have bf16 VPU+EUP paths; v5e and older do not.
    try:
        kind = jax.devices()[0].device_kind.lower()
        return any(tag in kind for tag in ("v6", "v7"))
    except Exception:
        return False


def _inv2(shape):
    """BlockSpec for a grid-invariant input of a rank-2 grid (single-buffered)."""
    nd = len(shape)
    index_map = lambda b, t, _nd=nd: (0,) * _nd
    if _BUFFERED is not None:
        try:
            return pl.BlockSpec(shape, index_map, pipeline_mode=_BUFFERED(1))
        except TypeError:
            pass
    return pl.BlockSpec(shape, index_map)


# ----------------------------------------------------------------------------
# in-kernel helpers
# ----------------------------------------------------------------------------
def _layernorm(x, gamma, beta):
    mu = jnp.mean(x, axis=-1, keepdims=True)
    var = jnp.mean(jnp.square(x - mu), axis=-1, keepdims=True)
    return (x - mu) * lax.rsqrt(var + EPS) * gamma + beta


def _gelu_tanh(x):
    # TODO(synk): PyTorch nn.GELU() is the exact erf form; erf is not guaranteed
    # to lower in Mosaic, so the tanh approximation is used here AND in the
    # pure-JAX reference so both paths match.  Python-float constants keep the
    # computation in the input dtype (bf16 on v6e/v7x).
    c = 0.7978845608028654  # sqrt(2/pi)
    return 0.5 * x * (1.0 + jnp.tanh(c * (x + 0.044715 * x * x * x)))


# ----------------------------------------------------------------------------
# Pallas kernels
# ----------------------------------------------------------------------------
def patch_embed_kernel(p_ref, pos_ref, w_ref, b_ref, out_ref):
    # p_ref: (1, TN, patch_dim) bf16, pos_ref: (1, TN, D) f32 (fused pos add).
    out_ref[0] = (
        jnp.dot(p_ref[0], w_ref[...], preferred_element_type=jnp.float32)
        + b_ref[...]
        + pos_ref[0]
    )


def qkv_kernel(x_ref, g1_ref, b1_ref, wqkv_ref, q_ref, k_ref, v_ref, *, inner):
    # LN1 + fused QKV projection, done ONCE per token per layer.
    # Softmax scale is already folded into the Q columns of wqkv host-side.
    xn = _layernorm(x_ref[0], g1_ref[...], b1_ref[...]).astype(BF16)       # (ts, D)
    qkv = jnp.dot(xn, wqkv_ref[...], preferred_element_type=jnp.float32)   # (ts, 3i)
    q_ref[0] = qkv[:, :inner].astype(BF16)
    k_ref[0] = qkv[:, inner:2 * inner].astype(BF16)
    v_ref[0] = qkv[:, 2 * inner:].astype(BF16)


def attn_mlp_kernel(
    x_ref, q_ref, k_ref, v_ref,
    wo_ref, bo_ref, g2_ref, b2_ref,
    w1_ref, bb1_ref, w2_ref, bb2_ref,
    out_ref,
    *, heads, dim_head, n_valid, n_padded, bf16_act,
):
    x = x_ref[0]                         # (TQ, D)     f32 residual stream
    q = q_ref[0]                         # (TQ, inner) bf16, scale pre-folded
    k = k_ref[0]                         # (Np, inner) bf16
    v = v_ref[0]                         # (Np, inner) bf16
    wo = wo_ref[...]                     # (inner, D)  bf16

    if n_padded > n_valid:
        kmask = lax.broadcasted_iota(jnp.int32, (x.shape[0], n_padded), 1) < n_valid

    # Per-head attention; the output projection is folded per head
    # (o_h @ wo[h*dh:(h+1)*dh, :]) so no lane-axis concatenation is needed.
    attn_out = bo_ref[...]               # (1, D), broadcasts on add
    for h in range(heads):               # static unroll over heads
        sl = slice(h * dim_head, (h + 1) * dim_head)
        qh, kh, vh = q[:, sl], k[:, sl], v[:, sl]
        dots = lax.dot_general(qh, kh, (((1,), (1,)), ((), ())),
                               preferred_element_type=jnp.float32)        # (TQ, Np)
        if n_padded > n_valid:
            dots = jnp.where(kmask, dots, jnp.float32(-1e30))             # mask THEN max
        dots = dots - jnp.max(dots, axis=-1, keepdims=True)
        e = jnp.exp(dots)
        p = e * pl.reciprocal(jnp.sum(e, axis=-1, keepdims=True), approx=True)
        oh = jnp.dot(p.astype(BF16), vh, preferred_element_type=jnp.float32)   # (TQ, dh)
        attn_out = attn_out + jnp.dot(oh.astype(BF16), wo[sl, :],
                                      preferred_element_type=jnp.float32)       # (TQ, D)

    x1 = x + attn_out                                                   # residual (f32)

    # MLP with fully VMEM-resident w1/w2 (no hidden-dim streaming / scratch).
    x1n = _layernorm(x1, g2_ref[...], b2_ref[...]).astype(BF16)
    hid = jnp.dot(x1n, w1_ref[...], preferred_element_type=jnp.float32) + bb1_ref[...]
    if bf16_act:
        hid = _gelu_tanh(hid.astype(BF16))          # bf16 EUP/VPU on v6e/v7x
    else:
        hid = _gelu_tanh(hid).astype(BF16)          # f32 path (v5e and older)
    out_ref[0] = x1 + bb2_ref[...] + jnp.dot(hid, w2_ref[...],
                                             preferred_element_type=jnp.float32)


def head_kernel(x_ref, g_ref, b_ref, w_ref, bias_ref, out_ref):
    # x_ref: (TB, D) f32 CLS tokens; w_ref: (D, NCp) bf16 (lane-dense padded).
    xn = _layernorm(x_ref[...], g_ref[...], b_ref[...]).astype(BF16)
    out_ref[...] = (
        jnp.dot(xn, w_ref[...], preferred_element_type=jnp.float32) + bias_ref[...]
    )


# ----------------------------------------------------------------------------
# wrappers (pallas_call plumbing)
# ----------------------------------------------------------------------------
def patch_embed(patches, pos_patches, w, b, *, vmem_limit):
    # patches: (B, N, P) f32; pos_patches: (1, N, D) f32 (pos rows 1..N).
    B, N, P = patches.shape
    D = w.shape[1]
    TN = N
    for cand in (256, 128, 64, 32, 16, 8):
        if N >= cand and N % cand == 0:
            TN = cand
            break

    return pl.pallas_call(
        patch_embed_kernel,
        out_shape=jax.ShapeDtypeStruct((B, N, D), jnp.float32),
        grid=(B, N // TN),
        in_specs=[
            pl.BlockSpec((1, TN, P), lambda b, t: (b, t, 0)),
            pl.BlockSpec((1, TN, D), lambda b, t: (0, t, 0)),
            _inv2((P, D)),
            _inv2((1, D)),
        ],
        out_specs=pl.BlockSpec((1, TN, D), lambda b, t: (b, t, 0)),
        compiler_params=pltpu.CompilerParams(
            dimension_semantics=("parallel", "parallel"),
            vmem_limit_bytes=vmem_limit),
    )(patches.astype(BF16), pos_patches, w.astype(BF16), b)


def qkv_project(x, g1, b1, wqkv_scaled, *, tq, vmem_limit):
    # x: (B, Np, D) f32 padded token stream; wqkv_scaled: (D, 3*inner) bf16.
    B, Np, D = x.shape
    inner3 = wqkv_scaled.shape[1]
    inner = inner3 // 3
    out_shape = (
        jax.ShapeDtypeStruct((B, Np, inner), BF16),
        jax.ShapeDtypeStruct((B, Np, inner), BF16),
        jax.ShapeDtypeStruct((B, Np, inner), BF16),
    )
    tile_spec = pl.BlockSpec((1, tq, inner), lambda b, t: (b, t, 0))
    return pl.pallas_call(
        functools.partial(qkv_kernel, inner=inner),
        out_shape=out_shape,
        grid=(B, Np // tq),
        in_specs=[
            pl.BlockSpec((1, tq, D), lambda b, t: (b, t, 0)),
            _inv2((1, D)),
            _inv2((1, D)),
            _inv2((D, inner3)),
        ],
        out_specs=(tile_spec, tile_spec, tile_spec),
        compiler_params=pltpu.CompilerParams(
            dimension_semantics=("parallel", "parallel"),
            vmem_limit_bytes=vmem_limit),
    )(x, g1, b1, wqkv_scaled)


def _attn_mlp_vmem_need(tq, np_, d, inner, h):
    f32, bf = 4, 2
    weights = (inner * d + d * h + h * d) * bf + (4 * d + h) * f32      # Buffered(1)
    per_tile = (tq * d * f32            # x residual tile
                + tq * inner * bf       # q tile
                + 2 * np_ * inner * bf  # k + v (full sequence)
                + tq * d * f32)         # output tile
    temps = tq * h * f32 + 2 * tq * np_ * f32 + 6 * tq * d * f32
    return weights + 2 * per_tile + temps


def attn_mlp(x, q, k, v, wo, bo, g2, b2, w1, bb1, w2, bb2,
             *, heads, dim_head, n_valid, tq, bf16_act):
    B, Np, D = x.shape
    inner = heads * dim_head
    H = w1.shape[1]
    vmem_limit = _vmem_limit_for(_attn_mlp_vmem_need(tq, Np, D, inner, H))

    kern = functools.partial(attn_mlp_kernel, heads=heads, dim_head=dim_head,
                             n_valid=n_valid, n_padded=Np, bf16_act=bf16_act)
    # TODO(synk): for models whose (w1, w2) do not fit VMEM even single-buffered
    # (H >> 8k at f32-ish widths), a hidden-dim streaming pass with the h chunk
    # outermost (reused across all (b, q)) would be needed; not required here.
    return pl.pallas_call(
        kern,
        out_shape=jax.ShapeDtypeStruct((B, Np, D), jnp.float32),
        grid=(B, Np // tq),
        in_specs=[
            pl.BlockSpec((1, tq, D), lambda b, t: (b, t, 0)),      # x residual tile
            pl.BlockSpec((1, tq, inner), lambda b, t: (b, t, 0)),  # q tile
            pl.BlockSpec((1, Np, inner), lambda b, t: (b, 0, 0)),  # k (full seq)
            pl.BlockSpec((1, Np, inner), lambda b, t: (b, 0, 0)),  # v (full seq)
            _inv2((inner, D)),                                     # wo
            _inv2((1, D)),                                         # bo
            _inv2((1, D)), _inv2((1, D)),                          # g2, b2
            _inv2((D, H)), _inv2((1, H)),                          # w1, bb1 (resident)
            _inv2((H, D)), _inv2((1, D)),                          # w2, bb2 (resident)
        ],
        out_specs=pl.BlockSpec((1, tq, D), lambda b, t: (b, t, 0)),
        compiler_params=pltpu.CompilerParams(
            dimension_semantics=("parallel", "parallel"),
            vmem_limit_bytes=vmem_limit),
    )(x, q, k, v, wo, bo, g2, b2, w1, bb1, w2, bb2)


def encoder_block(x, p, *, heads, dim_head, n_valid, tq, bf16_act, vmem_limit):
    inner = heads * dim_head
    scale = dim_head ** -0.5

    # Host-side weight prep: fold softmax scale into the Q columns, bf16-cast.
    wqkv = p["wqkv"]
    wqkv_scaled = jnp.concatenate(
        [wqkv[:, :inner] * scale, wqkv[:, inner:]], axis=1).astype(BF16)

    q, k, v = qkv_project(x, p["g1"], p["b1"], wqkv_scaled,
                          tq=tq, vmem_limit=vmem_limit)

    return attn_mlp(
        x, q, k, v,
        p["wo"].astype(BF16), p["bo"], p["g2"], p["b2"],
        p["w1"].astype(BF16), p["bb1"], p["w2"].astype(BF16), p["bb2"],
        heads=heads, dim_head=dim_head, n_valid=n_valid, tq=tq, bf16_act=bf16_act)


def mlp_head(x_cls, g, b, w, bias, *, vmem_limit):
    B, D = x_cls.shape
    nc = w.shape[1]
    NCp = _round_up(nc, 128)                 # lane-dense output stores
    TB = 256 if B >= 256 else _round_up(B, 8)
    Bp = _round_up(B, TB)

    x = jnp.pad(x_cls, ((0, Bp - B), (0, 0))) if Bp != B else x_cls
    w_p = jnp.pad(w, ((0, 0), (0, NCp - nc))).astype(BF16)
    bias_p = jnp.pad(bias, ((0, 0), (0, NCp - nc)))

    out = pl.pallas_call(
        head_kernel,
        out_shape=jax.ShapeDtypeStruct((Bp, NCp), jnp.float32),
        grid=(Bp // TB,),
        in_specs=[
            pl.BlockSpec((TB, D), lambda i: (i, 0)),
            pl.BlockSpec((1, D), lambda i: (0, 0)),
            pl.BlockSpec((1, D), lambda i: (0, 0)),
            pl.BlockSpec((D, NCp), lambda i: (0, 0)),
            pl.BlockSpec((1, NCp), lambda i: (0, 0)),
        ],
        out_specs=pl.BlockSpec((TB, NCp), lambda i: (i, 0)),
        compiler_params=pltpu.CompilerParams(
            dimension_semantics=("parallel",), vmem_limit_bytes=vmem_limit),
    )(x, g, b, w_p, bias_p)
    return out[:B, :nc]


def _to_patches(images, patch_size):
    # 'b c (h p1) (w p2) -> b (h w) (p1 p2 c)'
    B, C, H, W = images.shape
    ph = pw = patch_size
    hh, ww = H // ph, W // pw
    x = images.reshape(B, C, hh, ph, ww, pw)
    x = jnp.transpose(x, (0, 2, 4, 3, 5, 1))
    return x.reshape(B, hh * ww, ph * pw * C)


def vit_forward(images, params, *, patch_size, heads, dim_head):
    vmem_limit = _default_vmem_limit_bytes()
    bf16_act = _bf16_act_supported()

    x = _to_patches(images, patch_size)          # (B, N, patch_dim)
    B, N, _ = x.shape
    D = params["patch_w"].shape[1]
    pos = params["pos_embedding"]                # (1, N+1, D)

    # Patch embedding with the positional add fused in (rows 1..N of pos).
    emb = patch_embed(x, pos[:, 1:N + 1], params["patch_w"], params["patch_b"],
                      vmem_limit=vmem_limit)     # (B, N, D)

    cls = jnp.broadcast_to(params["class_token"] + pos[:, :1], (B, 1, D))
    tok = jnp.concatenate([cls, emb], axis=1)
    # embedding_dropout(p=0) -> identity

    # Query-tile selection: a single full-sequence tile (<=256 rows) fills the
    # 256x256 MXUs on v6e/v7x and avoids any K/V re-reads; otherwise 256-row
    # tiles.  Padded key rows are masked inside the attention kernel.
    # TODO(synk): on v7x (2 TCs) with batch==1 and a single query tile, halving
    # TQ would keep both TensorCores busy.
    N1 = N + 1
    if N1 <= 256:
        N1p = _round_up(N1, 8)
        TQ = N1p
    else:
        TQ = 256
        N1p = _round_up(N1, TQ)
    if N1p != N1:
        tok = jnp.pad(tok, ((0, 0), (0, N1p - N1), (0, 0)))

    # TODO(synk): heads==1 and dim_head==width would make to_out an Identity in
    # the PyTorch module; this path always applies the output projection.
    for blk in params["blocks"]:
        tok = encoder_block(tok, blk, heads=heads, dim_head=dim_head,
                            n_valid=N1, tq=TQ, bf16_act=bf16_act,
                            vmem_limit=vmem_limit)

    cls_out = tok[:, 0]                           # (B, D) -- row 0 is always valid
    return mlp_head(cls_out, params["head_g"], params["head_b"],
                    params["head_w"], params["head_bias"], vmem_limit=vmem_limit)


# ----------------------------------------------------------------------------
# pure-JAX f32 reference (same math, no Pallas) for a correctness check
# ----------------------------------------------------------------------------
def vit_reference(images, params, *, patch_size, heads, dim_head):
    x = _to_patches(images, patch_size)
    B, N, _ = x.shape
    D = params["patch_w"].shape[1]
    inner = heads * dim_head

    emb = x @ params["patch_w"] + params["patch_b"]
    cls = jnp.broadcast_to(params["class_token"], (B, 1, D))
    tok = jnp.concatenate([cls, emb], axis=1) + params["pos_embedding"][:, :N + 1]
    N1 = N + 1

    def ln(t, g, b):
        mu = jnp.mean(t, axis=-1, keepdims=True)
        var = jnp.mean(jnp.square(t - mu), axis=-1, keepdims=True)
        return (t - mu) * lax.rsqrt(var + EPS) * g + b

    for blk in params["blocks"]:
        xn = ln(tok, blk["g1"], blk["b1"])
        qkv = xn @ blk["wqkv"]                                   # (B, N1, 3*inner)
        q, k, v = jnp.split(qkv, 3, axis=-1)
        split = lambda t: t.reshape(B, N1, heads, dim_head).transpose(0, 2, 1, 3)
        q, k, v = split(q), split(k), split(v)
        dots = jnp.einsum("bhnd,bhmd->bhnm", q, k) * (dim_head ** -0.5)
        attn = jax.nn.softmax(dots, axis=-1)
        o = jnp.einsum("bhnm,bhmd->bhnd", attn, v)
        o = o.transpose(0, 2, 1, 3).reshape(B, N1, inner)
        x1 = tok + (o @ blk["wo"] + blk["bo"])
        x1n = ln(x1, blk["g2"], blk["b2"])
        hid = _gelu_tanh(x1n @ blk["w1"] + blk["bb1"])
        tok = x1 + (hid @ blk["w2"] + blk["bb2"])

    cls_out = tok[:, 0]
    xn = ln(cls_out, params["head_g"], params["head_b"])
    return xn @ params["head_w"] + params["head_bias"]


# ----------------------------------------------------------------------------
# deterministic parameter init (shapes follow the PyTorch module __init__)
# ----------------------------------------------------------------------------
def _linear_init(key, fan_in, fan_out):
    kw, kb = jax.random.split(key)
    lim = 1.0 / np.sqrt(fan_in)
    w = jax.random.uniform(kw, (fan_in, fan_out), jnp.float32, -lim, lim)
    b = jax.random.uniform(kb, (1, fan_out), jnp.float32, -lim, lim)
    return w, b


def init_vit_params(key, cfg):
    C, ps = cfg["channels"], cfg["patch_size"]
    D, depth = cfg["width"], cfg["depth"]
    heads, dh = cfg["heads"], cfg["dim_head"]
    H, nc = cfg["mlp_width"], cfg["num_classes"]
    num_patches = (cfg["image_size"] // ps) ** 2
    patch_dim = C * ps * ps
    inner = heads * dh

    keys = jax.random.split(key, 4 + depth)
    params = {}
    params["patch_w"], params["patch_b"] = _linear_init(keys[0], patch_dim, D)
    params["pos_embedding"] = jax.random.normal(keys[1], (1, num_patches + 1, D), jnp.float32)
    params["class_token"] = jax.random.normal(keys[2], (1, 1, D), jnp.float32)

    blocks = []
    for i in range(depth):
        bk = jax.random.split(keys[4 + i], 4)
        wqkv, _ = _linear_init(bk[0], D, 3 * inner)            # to_qkv has bias=False
        wo, bo = _linear_init(bk[1], inner, D)
        w1, bb1 = _linear_init(bk[2], D, H)
        w2, bb2 = _linear_init(bk[3], H, D)
        blocks.append(dict(
            g1=jnp.ones((1, D), jnp.float32), b1=jnp.zeros((1, D), jnp.float32),
            wqkv=wqkv, wo=wo, bo=bo,
            g2=jnp.ones((1, D), jnp.float32), b2=jnp.zeros((1, D), jnp.float32),
            w1=w1, bb1=bb1, w2=w2, bb2=bb2,
        ))
    params["blocks"] = blocks

    params["head_g"] = jnp.ones((1, D), jnp.float32)
    params["head_b"] = jnp.zeros((1, D), jnp.float32)
    params["head_w"], params["head_bias"] = _linear_init(keys[3], D, nc)
    return params


# ----------------------------------------------------------------------------
if __name__ == "__main__":
    cfg = dict(image_size=16, patch_size=4, num_classes=10, width=32, depth=2,
               heads=2, mlp_width=64, channels=4, dim_head=16)

    key = jax.random.PRNGKey(0)
    pkey, ikey = jax.random.split(key)
    params = init_vit_params(pkey, cfg)
    images = jax.random.normal(
        ikey, (2, cfg["channels"], cfg["image_size"], cfg["image_size"]), jnp.float32)

    fwd = jax.jit(functools.partial(
        vit_forward, patch_size=cfg["patch_size"],
        heads=cfg["heads"], dim_head=cfg["dim_head"]))
    out = jax.block_until_ready(fwd(images, params))
    assert out.shape == (2, cfg["num_classes"])

    with jax.default_matmul_precision("highest"):
        ref = jax.block_until_ready(
            vit_reference(images, params, patch_size=cfg["patch_size"],
                          heads=cfg["heads"], dim_head=cfg["dim_head"]))

    # Kernel uses bf16 MXU operands (f32 accumulation) and approx reciprocal in
    # the softmax -> loosened tolerance vs. the all-f32 "highest" reference.
    np.testing.assert_allclose(np.asarray(out), np.asarray(ref), rtol=5e-2, atol=5e-2)
    print("KERNEL_OK")
</pallas_src>

<mosaic_0001>
module attributes {stable_mosaic.version = 11 : i64} {
  func.func @patch_embed_kernel(%arg0: i32, %arg1: i32, %arg2: memref<1x16x64xbf16, #tpu.memory_space<vmem>>, %arg3: memref<1x16x32xf32, #tpu.memory_space<vmem>>, %arg4: memref<64x32xbf16, #tpu.memory_space<vmem>>, %arg5: memref<1x32xf32, #tpu.memory_space<vmem>>, %arg6: memref<1x16x32xf32, #tpu.memory_space<vmem>>) attributes {dimension_semantics = [#tpu.dimension_semantics<parallel>, #tpu.dimension_semantics<parallel>], iteration_bounds = array<i64: 2, 1>, scalar_prefetch = 0 : i64, scratch_operands = 0 : i64, tpu.core_type = #tpu.core_type<tc>, window_params = [{transform_indices = @transform_0, window_bounds = array<i64: 1, 16, 64>}, {transform_indices = @transform_1, window_bounds = array<i64: 1, 16, 32>}, {pipeline_mode = #tpu.pipeline_mode<synchronous>, transform_indices = @transform_2, window_bounds = array<i64: 64, 32>}, {pipeline_mode = #tpu.pipeline_mode<synchronous>, transform_indices = @transform_3, window_bounds = array<i64: 1, 32>}, {transform_indices = @transform_4, window_bounds = array<i64: 1, 16, 32>}]} {
    %c0 = arith.constant 0 : index
    %c0_0 = arith.constant 0 : index
    %c0_1 = arith.constant 0 : index
    %0 = vector.load %arg2[%c0, %c0_0, %c0_1] : memref<1x16x64xbf16, #tpu.memory_space<vmem>>, vector<1x16x64xbf16>
    %1 = vector.shape_cast %0 : vector<1x16x64xbf16> to vector<16x64xbf16>
    %c0_2 = arith.constant 0 : index
    %c0_3 = arith.constant 0 : index
    %2 = vector.load %arg4[%c0_2, %c0_3] : memref<64x32xbf16, #tpu.memory_space<vmem>>, vector<64x32xbf16>
    %cst = arith.constant dense<0.000000e+00> : vector<16x32xf32>
    %3 = tpu.matmul %1, %2, %cst {dimension_numbers = #tpu.dot_dimension_numbers<[1], [0], [0], [1], [0, 0, 1, 1], [], []>} : vector<16x64xbf16>, vector<64x32xbf16>, vector<16x32xf32> -> vector<16x32xf32>
    %c0_4 = arith.constant 0 : index
    %c0_5 = arith.constant 0 : index
    %4 = vector.load %arg5[%c0_4, %c0_5] : memref<1x32xf32, #tpu.memory_space<vmem>>, vector<1x32xf32>
    %5 = vector.broadcast %4 : vector<1x32xf32> to vector<16x32xf32>
    %6 = arith.addf %3, %5 : vector<16x32xf32>
    %c0_6 = arith.constant 0 : index
    %c0_7 = arith.constant 0 : index
    %c0_8 = arith.constant 0 : index
    %7 = vector.load %arg3[%c0_6, %c0_7, %c0_8] : memref<1x16x32xf32, #tpu.memory_space<vmem>>, vector<1x16x32xf32>
    %8 = vector.shape_cast %7 : vector<1x16x32xf32> to vector<16x32xf32>
    %9 = arith.addf %6, %8 : vector<16x32xf32>
    %c0_9 = arith.constant 0 : index
    %c0_10 = arith.constant 0 : index
    %c0_11 = arith.constant 0 : index
    %10 = vector.load %arg6[%c0_9, %c0_10, %c0_11] : memref<1x16x32xf32, #tpu.memory_space<vmem>>, vector<1x16x32xf32>
    %11 = vector.shape_cast %10 : vector<1x16x32xf32> to vector<16x32xf32>
    %12 = vector.shape_cast %9 : vector<16x32xf32> to vector<1x16x32xf32>
    tpu.vector_store %arg6[%c0_9, %c0_10, %c0_11], %12 {strides = array<i32>} : memref<1x16x32xf32, #tpu.memory_space<vmem>>, vector<1x16x32xf32>,
    return
  }
  func.func @transform_0(%arg0: i32, %arg1: i32) -> (i32, i32, i32) {
    %c0_i32 = arith.constant 0 : i32
    %c0_i32_0 = arith.constant 0 : i32
    return %arg0, %arg1, %c0_i32 : i32, i32, i32
  }
  func.func @transform_1(%arg0: i32, %arg1: i32) -> (i32, i32, i32) {
    %c0_i32 = arith.constant 0 : i32
    %c0_i32_0 = arith.constant 0 : i32
    %c0_i32_1 = arith.constant 0 : i32
    return %c0_i32, %arg1, %c0_i32_0 : i32, i32, i32
  }
  func.func @transform_2(%arg0: i32, %arg1: i32) -> (i32, i32) {
    %c0_i32 = arith.constant 0 : i32
    %c0_i32_0 = arith.constant 0 : i32
    %c0_i32_1 = arith.constant 0 : i32
    return %c0_i32, %c0_i32_0 : i32, i32
  }
  func.func @transform_3(%arg0: i32, %arg1: i32) -> (i32, i32) {
    %c0_i32 = arith.constant 0 : i32
    %c0_i32_0 = arith.constant 0 : i32
    %c0_i32_1 = arith.constant 0 : i32
    return %c0_i32, %c0_i32_0 : i32, i32
  }
  func.func @transform_4(%arg0: i32, %arg1: i32) -> (i32, i32, i32) {
    %c0_i32 = arith.constant 0 : i32
    %c0_i32_0 = arith.constant 0 : i32
    return %arg0, %arg1, %c0_i32 : i32, i32, i32
  }
}

module attributes {stable_mosaic.version = 11 : i64} {
  func.func @qkv_kernel(%arg0: i32, %arg1: i32, %arg2: memref<1x24x32xf32, #tpu.memory_space<vmem>>, %arg3: memref<1x32xf32, #tpu.memory_space<vmem>>, %arg4: memref<1x32xf32, #tpu.memory_space<vmem>>, %arg5: memref<32x96xbf16, #tpu.memory_space<vmem>>, %arg6: memref<1x24x32xbf16, #tpu.memory_space<vmem>>, %arg7: memref<1x24x32xbf16, #tpu.memory_space<vmem>>, %arg8: memref<1x24x32xbf16, #tpu.memory_space<vmem>>) attributes {dimension_semantics = [#tpu.dimension_semantics<parallel>, #tpu.dimension_semantics<parallel>], iteration_bounds = array<i64: 2, 1>, scalar_prefetch = 0 : i64, scratch_operands = 0 : i64, tpu.core_type = #tpu.core_type<tc>, window_params = [{transform_indices = @transform_0, window_bounds = array<i64: 1, 24, 32>}, {pipeline_mode = #tpu.pipeline_mode<synchronous>, transform_indices = @transform_1, window_bounds = array<i64: 1, 32>}, {pipeline_mode = #tpu.pipeline_mode<synchronous>, transform_indices = @transform_2, window_bounds = array<i64: 1, 32>}, {pipeline_mode = #tpu.pipeline_mode<synchronous>, transform_indices = @transform_3, window_bounds = array<i64: 32, 96>}, {transform_indices = @transform_4, window_bounds = array<i64: 1, 24, 32>}, {transform_indices = @transform_5, window_bounds = array<i64: 1, 24, 32>}, {transform_indices = @transform_6, window_bounds = array<i64: 1, 24, 32>}]} {
    %c0 = arith.constant 0 : index
    %c0_0 = arith.constant 0 : index
    %c0_1 = arith.constant 0 : index
    %0 = vector.load %arg2[%c0, %c0_0, %c0_1] : memref<1x24x32xf32, #tpu.memory_space<vmem>>, vector<1x24x32xf32>
    %1 = vector.shape_cast %0 : vector<1x24x32xf32> to vector<24x32xf32>
    %c0_2 = arith.constant 0 : index
    %c0_3 = arith.constant 0 : index
    %2 = vector.load %arg3[%c0_2, %c0_3] : memref<1x32xf32, #tpu.memory_space<vmem>>, vector<1x32xf32>
    %c0_4 = arith.constant 0 : index
    %c0_5 = arith.constant 0 : index
    %3 = vector.load %arg4[%c0_4, %c0_5] : memref<1x32xf32, #tpu.memory_space<vmem>>, vector<1x32xf32>
    %cst = arith.constant dense<0.000000e+00> : vector<24xf32>
    %4 = vector.multi_reduction <add>, %1, %cst [1] : vector<24x32xf32> to vector<24xf32>
    %5 = vector.shape_cast %4 : vector<24xf32> to vector<24x1xf32>
    %cst_6 = arith.constant 3.200000e+01 : f32
    %6 = vector.broadcast %cst_6 : f32 to vector<24x1xf32>
    %7 = arith.divf %5, %6 : vector<24x1xf32>
    %8 = vector.broadcast %7 : vector<24x1xf32> to vector<24x32xf32>
    %9 = arith.subf %1, %8 : vector<24x32xf32>
    %10 = arith.mulf %9, %9 : vector<24x32xf32>
    %cst_7 = arith.constant dense<0.000000e+00> : vector<24xf32>
    %11 = vector.multi_reduction <add>, %10, %cst_7 [1] : vector<24x32xf32> to vector<24xf32>
    %12 = vector.shape_cast %11 : vector<24xf32> to vector<24x1xf32>
    %cst_8 = arith.constant 3.200000e+01 : f32
    %13 = vector.broadcast %cst_8 : f32 to vector<24x1xf32>
    %14 = arith.divf %12, %13 : vector<24x1xf32>
    %15 = vector.broadcast %7 : vector<24x1xf32> to vector<24x32xf32>
    %16 = arith.subf %1, %15 : vector<24x32xf32>
    %cst_9 = arith.constant 9.99999974E-6 : f32
    %17 = vector.broadcast %cst_9 : f32 to vector<24x1xf32>
    %18 = arith.addf %14, %17 : vector<24x1xf32>
    %19 = math.rsqrt %18 : vector<24x1xf32>
    %20 = vector.broadcast %19 : vector<24x1xf32> to vector<24x32xf32>
    %21 = arith.mulf %16, %20 : vector<24x32xf32>
    %22 = vector.broadcast %2 : vector<1x32xf32> to vector<24x32xf32>
    %23 = arith.mulf %21, %22 : vector<24x32xf32>
    %24 = vector.broadcast %3 : vector<1x32xf32> to vector<24x32xf32>
    %25 = arith.addf %23, %24 : vector<24x32xf32>
    %26 = arith.truncf %25 : vector<24x32xf32> to vector<24x32xbf16>
    %c0_10 = arith.constant 0 : index
    %c0_11 = arith.constant 0 : index
    %27 = vector.load %arg5[%c0_10, %c0_11] : memref<32x96xbf16, #tpu.memory_space<vmem>>, vector<32x96xbf16>
    %cst_12 = arith.constant dense<0.000000e+00> : vector<24x96xf32>
    %28 = tpu.matmul %26, %27, %cst_12 {dimension_numbers = #tpu.dot_dimension_numbers<[1], [0], [0], [1], [0, 0, 1, 1], [], []>} : vector<24x32xbf16>, vector<32x96xbf16>, vector<24x96xf32> -> vector<24x96xf32>
    %29 = vector.extract_strided_slice %28 {offsets = [0, 0], sizes = [24, 32], strides = [1, 1]} : vector<24x96xf32> to vector<24x32xf32>
    %30 = arith.truncf %29 : vector<24x32xf32> to vector<24x32xbf16>
    %c0_13 = arith.constant 0 : index
    %c0_14 = arith.constant 0 : index
    %c0_15 = arith.constant 0 : index
    %31 = vector.load %arg6[%c0_13, %c0_14, %c0_15] : memref<1x24x32xbf16, #tpu.memory_space<vmem>>, vector<1x24x32xbf16>
    %32 = vector.shape_cast %31 : vector<1x24x32xbf16> to vector<24x32xbf16>
    %33 = vector.shape_cast %30 : vector<24x32xbf16> to vector<1x24x32xbf16>
    tpu.vector_store %arg6[%c0_13, %c0_14, %c0_15], %33 {strides = array<i32>} : memref<1x24x32xbf16, #tpu.memory_space<vmem>>, vector<1x24x32xbf16>,
    %34 = vector.extract_strided_slice %28 {offsets = [0, 32], sizes = [24, 32], strides = [1, 1]} : vector<24x96xf32> to vector<24x32xf32>
    %35 = arith.truncf %34 : vector<24x32xf32> to vector<24x32xbf16>
    %c0_16 = arith.constant 0 : index
    %c0_17 = arith.constant 0 : index
    %c0_18 = arith.constant 0 : index
    %36 = vector.load %arg7[%c0_16, %c0_17, %c0_18] : memref<1x24x32xbf16, #tpu.memory_space<vmem>>, vector<1x24x32xbf16>
    %37 = vector.shape_cast %36 : vector<1x24x32xbf16> to vector<24x32xbf16>
    %38 = vector.shape_cast %35 : vector<24x32xbf16> to vector<1x24x32xbf16>
    tpu.vector_store %arg7[%c0_16, %c0_17, %c0_18], %38 {strides = array<i32>} : memref<1x24x32xbf16, #tpu.memory_space<vmem>>, vector<1x24x32xbf16>,
    %39 = vector.extract_strided_slice %28 {offsets = [0, 64], sizes = [24, 32], strides = [1, 1]} : vector<24x96xf32> to vector<24x32xf32>
    %40 = arith.truncf %39 : vector<24x32xf32> to vector<24x32xbf16>
    %c0_19 = arith.constant 0 : index
    %c0_20 = arith.constant 0 : index
    %c0_21 = arith.constant 0 : index
    %41 = vector.load %arg8[%c0_19, %c0_20, %c0_21] : memref<1x24x32xbf16, #tpu.memory_space<vmem>>, vector<1x24x32xbf16>
    %42 = vector.shape_cast %41 : vector<1x24x32xbf16> to vector<24x32xbf16>
    %43 = vector.shape_cast %40 : vector<24x32xbf16> to vector<1x24x32xbf16>
    tpu.vector_store %arg8[%c0_19, %c0_20, %c0_21], %43 {strides = array<i32>} : memref<1x24x32xbf16, #tpu.memory_space<vmem>>, vector<1x24x32xbf16>,
    return
  }
  func.func @transform_0(%arg0: i32, %arg1: i32) -> (i32, i32, i32) {
    %c0_i32 = arith.constant 0 : i32
    %c0_i32_0 = arith.constant 0 : i32
    return %arg0, %arg1, %c0_i32 : i32, i32, i32
  }
  func.func @transform_1(%arg0: i32, %arg1: i32) -> (i32, i32) {
    %c0_i32 = arith.constant 0 : i32
    %c0_i32_0 = arith.constant 0 : i32
    %c0_i32_1 = arith.constant 0 : i32
    return %c0_i32, %c0_i32_0 : i32, i32
  }
  func.func @transform_2(%arg0: i32, %arg1: i32) -> (i32, i32) {
    %c0_i32 = arith.constant 0 : i32
    %c0_i32_0 = arith.constant 0 : i32
    %c0_i32_1 = arith.constant 0 : i32
    return %c0_i32, %c0_i32_0 : i32, i32
  }
  func.func @transform_3(%arg0: i32, %arg1: i32) -> (i32, i32) {
    %c0_i32 = arith.constant 0 : i32
    %c0_i32_0 = arith.constant 0 : i32
    %c0_i32_1 = arith.constant 0 : i32
    return %c0_i32, %c0_i32_0 : i32, i32
  }
  func.func @transform_4(%arg0: i32, %arg1: i32) -> (i32, i32, i32) {
    %c0_i32 = arith.constant 0 : i32
    %c0_i32_0 = arith.constant 0 : i32
    return %arg0, %arg1, %c0_i32 : i32, i32, i32
  }
  func.func @transform_5(%arg0: i32, %arg1: i32) -> (i32, i32, i32) {
    %c0_i32 = arith.constant 0 : i32
    %c0_i32_0 = arith.constant 0 : i32
    return %arg0, %arg1, %c0_i32 : i32, i32, i32
  }
  func.func @transform_6(%arg0: i32, %arg1: i32) -> (i32, i32, i32) {
    %c0_i32 = arith.constant 0 : i32
    %c0_i32_0 = arith.constant 0 : i32
    return %arg0, %arg1, %c0_i32 : i32, i32, i32
  }
}

module attributes {stable_mosaic.version = 11 : i64} {
  func.func @attn_mlp_kernel(%arg0: i32, %arg1: i32, %arg2: memref<1x24x32xf32, #tpu.memory_space<vmem>>, %arg3: memref<1x24x32xbf16, #tpu.memory_space<vmem>>, %arg4: memref<1x24x32xbf16, #tpu.memory_space<vmem>>, %arg5: memref<1x24x32xbf16, #tpu.memory_space<vmem>>, %arg6: memref<32x32xbf16, #tpu.memory_space<vmem>>, %arg7: memref<1x32xf32, #tpu.memory_space<vmem>>, %arg8: memref<1x32xf32, #tpu.memory_space<vmem>>, %arg9: memref<1x32xf32, #tpu.memory_space<vmem>>, %arg10: memref<32x64xbf16, #tpu.memory_space<vmem>>, %arg11: memref<1x64xf32, #tpu.memory_space<vmem>>, %arg12: memref<64x32xbf16, #tpu.memory_space<vmem>>, %arg13: memref<1x32xf32, #tpu.memory_space<vmem>>, %arg14: memref<1x24x32xf32, #tpu.memory_space<vmem>>) attributes {dimension_semantics = [#tpu.dimension_semantics<parallel>, #tpu.dimension_semantics<parallel>], iteration_bounds = array<i64: 2, 1>, scalar_prefetch = 0 : i64, scratch_operands = 0 : i64, tpu.core_type = #tpu.core_type<tc>, window_params = [{transform_indices = @transform_0, window_bounds = array<i64: 1, 24, 32>}, {transform_indices = @transform_1, window_bounds = array<i64: 1, 24, 32>}, {transform_indices = @transform_2, window_bounds = array<i64: 1, 24, 32>}, {transform_indices = @transform_3, window_bounds = array<i64: 1, 24, 32>}, {pipeline_mode = #tpu.pipeline_mode<synchronous>, transform_indices = @transform_4, window_bounds = array<i64: 32, 32>}, {pipeline_mode = #tpu.pipeline_mode<synchronous>, transform_indices = @transform_5, window_bounds = array<i64: 1, 32>}, {pipeline_mode = #tpu.pipeline_mode<synchronous>, transform_indices = @transform_6, window_bounds = array<i64: 1, 32>}, {pipeline_mode = #tpu.pipeline_mode<synchronous>, transform_indices = @transform_7, window_bounds = array<i64: 1, 32>}, {pipeline_mode = #tpu.pipeline_mode<synchronous>, transform_indices = @transform_8, window_bounds = array<i64: 32, 64>}, {pipeline_mode = #tpu.pipeline_mode<synchronous>, transform_indices = @transform_9, window_bounds = array<i64: 1, 64>}, {pipeline_mode = #tpu.pipeline_mode<synchronous>, transform_indices = @transform_10, window_bounds = array<i64: 64, 32>}, {pipeline_mode = #tpu.pipeline_mode<synchronous>, transform_indices = @transform_11, window_bounds = array<i64: 1, 32>}, {transform_indices = @transform_12, window_bounds = array<i64: 1, 24, 32>}]} {
    %c0 = arith.constant 0 : index
    %c0_0 = arith.constant 0 : index
    %c0_1 = arith.constant 0 : index
    %0 = vector.load %arg2[%c0, %c0_0, %c0_1] : memref<1x24x32xf32, #tpu.memory_space<vmem>>, vector<1x24x32xf32>
    %1 = vector.shape_cast %0 : vector<1x24x32xf32> to vector<24x32xf32>
    %c0_2 = arith.constant 0 : index
    %c0_3 = arith.constant 0 : index
    %c0_4 = arith.constant 0 : index
    %2 = vector.load %arg3[%c0_2, %c0_3, %c0_4] : memref<1x24x32xbf16, #tpu.memory_space<vmem>>, vector<1x24x32xbf16>
    %3 = vector.shape_cast %2 : vector<1x24x32xbf16> to vector<24x32xbf16>
    %c0_5 = arith.constant 0 : index
    %c0_6 = arith.constant 0 : index
    %c0_7 = arith.constant 0 : index
    %4 = vector.load %arg4[%c0_5, %c0_6, %c0_7] : memref<1x24x32xbf16, #tpu.memory_space<vmem>>, vector<1x24x32xbf16>
    %5 = vector.shape_cast %4 : vector<1x24x32xbf16> to vector<24x32xbf16>
    %c0_8 = arith.constant 0 : index
    %c0_9 = arith.constant 0 : index
    %c0_10 = arith.constant 0 : index
    %6 = vector.load %arg5[%c0_8, %c0_9, %c0_10] : memref<1x24x32xbf16, #tpu.memory_space<vmem>>, vector<1x24x32xbf16>
    %7 = vector.shape_cast %6 : vector<1x24x32xbf16> to vector<24x32xbf16>
    %c0_11 = arith.constant 0 : index
    %c0_12 = arith.constant 0 : index
    %8 = vector.load %arg6[%c0_11, %c0_12] : memref<32x32xbf16, #tpu.memory_space<vmem>>, vector<32x32xbf16>
    %9 = tpu.iota {dimensions = array<i32: 1>} : vector<24x24xi32>
    %c17_i32 = arith.constant 17 : i32
    %10 = vector.broadcast %c17_i32 : i32 to vector<24x24xi32>
    %11 = arith.cmpi slt, %9, %10 : vector<24x24xi32>
    %c0_13 = arith.constant 0 : index
    %c0_14 = arith.constant 0 : index
    %12 = vector.load %arg7[%c0_13, %c0_14] : memref<1x32xf32, #tpu.memory_space<vmem>>, vector<1x32xf32>
    %13 = vector.extract_strided_slice %3 {offsets = [0, 0], sizes = [24, 16], strides = [1, 1]} : vector<24x32xbf16> to vector<24x16xbf16>
    %14 = vector.extract_strided_slice %5 {offsets = [0, 0], sizes = [24, 16], strides = [1, 1]} : vector<24x32xbf16> to vector<24x16xbf16>
    %15 = vector.extract_strided_slice %7 {offsets = [0, 0], sizes = [24, 16], strides = [1, 1]} : vector<24x32xbf16> to vector<24x16xbf16>
    %cst = arith.constant dense<0.000000e+00> : vector<24x24xf32>
    %16 = tpu.matmul %13, %14, %cst {dimension_numbers = #tpu.dot_dimension_numbers<[1], [1], [0], [0], [0, 0, 1, 0], [], []>} : vector<24x16xbf16>, vector<24x16xbf16>, vector<24x24xf32> -> vector<24x24xf32>
    %cst_15 = arith.constant -1.000000e+30 : f32
    %17 = vector.broadcast %cst_15 : f32 to vector<24x24xf32>
    %18 = arith.select %11, %16, %17 : vector<24x24xi1>, vector<24x24xf32>
    %cst_16 = arith.constant dense<0xFF800000> : vector<24xf32>
    %19 = vector.multi_reduction <maximumf>, %18, %cst_16 [1] : vector<24x24xf32> to vector<24xf32>
    %20 = vector.shape_cast %19 : vector<24xf32> to vector<24x1xf32>
    %21 = vector.broadcast %20 : vector<24x1xf32> to vector<24x24xf32>
    %22 = arith.subf %18, %21 : vector<24x24xf32>
    %23 = math.exp %22 : vector<24x24xf32>
    %cst_17 = arith.constant dense<0.000000e+00> : vector<24xf32>
    %24 = vector.multi_reduction <add>, %23, %cst_17 [1] : vector<24x24xf32> to vector<24xf32>
    %25 = vector.shape_cast %24 : vector<24xf32> to vector<24x1xf32>
    %26 = tpu.reciprocal %25 {approx = true} : vector<24x1xf32> -> vector<24x1xf32>
    %27 = vector.broadcast %26 : vector<24x1xf32> to vector<24x24xf32>
    %28 = arith.mulf %23, %27 : vector<24x24xf32>
    %29 = arith.truncf %28 : vector<24x24xf32> to vector<24x24xbf16>
    %cst_18 = arith.constant dense<0.000000e+00> : vector<24x16xf32>
    %30 = tpu.matmul %29, %15, %cst_18 {dimension_numbers = #tpu.dot_dimension_numbers<[1], [0], [0], [1], [0, 0, 1, 1], [], []>} : vector<24x24xbf16>, vector<24x16xbf16>, vector<24x16xf32> -> vector<24x16xf32>
    %31 = arith.truncf %30 : vector<24x16xf32> to vector<24x16xbf16>
    %32 = vector.extract_strided_slice %8 {offsets = [0, 0], sizes = [16, 32], strides = [1, 1]} : vector<32x32xbf16> to vector<16x32xbf16>
    %cst_19 = arith.constant dense<0.000000e+00> : vector<24x32xf32>
    %33 = tpu.matmul %31, %32, %cst_19 {dimension_numbers = #tpu.dot_dimension_numbers<[1], [0], [0], [1], [0, 0, 1, 1], [], []>} : vector<24x16xbf16>, vector<16x32xbf16>, vector<24x32xf32> -> vector<24x32xf32>
    %34 = vector.broadcast %12 : vector<1x32xf32> to vector<24x32xf32>
    %35 = arith.addf %34, %33 : vector<24x32xf32>
    %36 = vector.extract_strided_slice %3 {offsets = [0, 16], sizes = [24, 16], strides = [1, 1]} : vector<24x32xbf16> to vector<24x16xbf16>
    %37 = vector.extract_strided_slice %5 {offsets = [0, 16], sizes = [24, 16], strides = [1, 1]} : vector<24x32xbf16> to vector<24x16xbf16>
    %38 = vector.extract_strided_slice %7 {offsets = [0, 16], sizes = [24, 16], strides = [1, 1]} : vector<24x32xbf16> to vector<24x16xbf16>
    %cst_20 = arith.constant dense<0.000000e+00> : vector<24x24xf32>
    %39 = tpu.matmul %36, %37, %cst_20 {dimension_numbers = #tpu.dot_dimension_numbers<[1], [1], [0], [0], [0, 0, 1, 0], [], []>} : vector<24x16xbf16>, vector<24x16xbf16>, vector<24x24xf32> -> vector<24x24xf32>
    %cst_21 = arith.constant -1.000000e+30 : f32
    %40 = vector.broadcast %cst_21 : f32 to vector<24x24xf32>
    %41 = arith.select %11, %39, %40 : vector<24x24xi1>, vector<24x24xf32>
    %cst_22 = arith.constant dense<0xFF800000> : vector<24xf32>
    %42 = vector.multi_reduction <maximumf>, %41, %cst_22 [1] : vector<24x24xf32> to vector<24xf32>
    %43 = vector.shape_cast %42 : vector<24xf32> to vector<24x1xf32>
    %44 = vector.broadcast %43 : vector<24x1xf32> to vector<24x24xf32>
    %45 = arith.subf %41, %44 : vector<24x24xf32>
    %46 = math.exp %45 : vector<24x24xf32>
    %cst_23 = arith.constant dense<0.000000e+00> : vector<24xf32>
    %47 = vector.multi_reduction <add>, %46, %cst_23 [1] : vector<24x24xf32> to vector<24xf32>
    %48 = vector.shape_cast %47 : vector<24xf32> to vector<24x1xf32>
    %49 = tpu.reciprocal %48 {approx = true} : vector<24x1xf32> -> vector<24x1xf32>
    %50 = vector.broadcast %49 : vector<24x1xf32> to vector<24x24xf32>
    %51 = arith.mulf %46, %50 : vector<24x24xf32>
    %52 = arith.truncf %51 : vector<24x24xf32> to vector<24x24xbf16>
    %cst_24 = arith.constant dense<0.000000e+00> : vector<24x16xf32>
    %53 = tpu.matmul %52, %38, %cst_24 {dimension_numbers = #tpu.dot_dimension_numbers<[1], [0], [0], [1], [0, 0, 1, 1], [], []>} : vector<24x24xbf16>, vector<24x16xbf16>, vector<24x16xf32> -> vector<24x16xf32>
    %54 = arith.truncf %53 : vector<24x16xf32> to vector<24x16xbf16>
    %55 = vector.extract_strided_slice %8 {offsets = [16, 0], sizes = [16, 32], strides = [1, 1]} : vector<32x32xbf16> to vector<16x32xbf16>
    %cst_25 = arith.constant dense<0.000000e+00> : vector<24x32xf32>
    %56 = tpu.matmul %54, %55, %cst_25 {dimension_numbers = #tpu.dot_dimension_numbers<[1], [0], [0], [1], [0, 0, 1, 1], [], []>} : vector<24x16xbf16>, vector<16x32xbf16>, vector<24x32xf32> -> vector<24x32xf32>
    %57 = arith.addf %35, %56 : vector<24x32xf32>
    %58 = arith.addf %1, %57 : vector<24x32xf32>
    %c0_26 = arith.constant 0 : index
    %c0_27 = arith.constant 0 : index
    %59 = vector.load %arg8[%c0_26, %c0_27] : memref<1x32xf32, #tpu.memory_space<vmem>>, vector<1x32xf32>
    %c0_28 = arith.constant 0 : index
    %c0_29 = arith.constant 0 : index
    %60 = vector.load %arg9[%c0_28, %c0_29] : memref<1x32xf32, #tpu.memory_space<vmem>>, vector<1x32xf32>
    %cst_30 = arith.constant dense<0.000000e+00> : vector<24xf32>
    %61 = vector.multi_reduction <add>, %58, %cst_30 [1] : vector<24x32xf32> to vector<24xf32>
    %62 = vector.shape_cast %61 : vector<24xf32> to vector<24x1xf32>
    %cst_31 = arith.constant 3.200000e+01 : f32
    %63 = vector.broadcast %cst_31 : f32 to vector<24x1xf32>
    %64 = arith.divf %62, %63 : vector<24x1xf32>
    %65 = vector.broadcast %64 : vector<24x1xf32> to vector<24x32xf32>
    %66 = arith.subf %58, %65 : vector<24x32xf32>
    %67 = arith.mulf %66, %66 : vector<24x32xf32>
    %cst_32 = arith.constant dense<0.000000e+00> : vector<24xf32>
    %68 = vector.multi_reduction <add>, %67, %cst_32 [1] : vector<24x32xf32> to vector<24xf32>
    %69 = vector.shape_cast %68 : vector<24xf32> to vector<24x1xf32>
    %cst_33 = arith.constant 3.200000e+01 : f32
    %70 = vector.broadcast %cst_33 : f32 to vector<24x1xf32>
    %71 = arith.divf %69, %70 : vector<24x1xf32>
    %72 = vector.broadcast %64 : vector<24x1xf32> to vector<24x32xf32>
    %73 = arith.subf %58, %72 : vector<24x32xf32>
    %cst_34 = arith.constant 9.99999974E-6 : f32
    %74 = vector.broadcast %cst_34 : f32 to vector<24x1xf32>
    %75 = arith.addf %71, %74 : vector<24x1xf32>
    %76 = math.rsqrt %75 : vector<24x1xf32>
    %77 = vector.broadcast %76 : vector<24x1xf32> to vector<24x32xf32>
    %78 = arith.mulf %73, %77 : vector<24x32xf32>
    %79 = vector.broadcast %59 : vector<1x32xf32> to vector<24x32xf32>
    %80 = arith.mulf %78, %79 : vector<24x32xf32>
    %81 = vector.broadcast %60 : vector<1x32xf32> to vector<24x32xf32>
    %82 = arith.addf %80, %81 : vector<24x32xf32>
    %83 = arith.truncf %82 : vector<24x32xf32> to vector<24x32xbf16>
    %c0_35 = arith.constant 0 : index
    %c0_36 = arith.constant 0 : index
    %84 = vector.load %arg10[%c0_35, %c0_36] : memref<32x64xbf16, #tpu.memory_space<vmem>>, vector<32x64xbf16>
    %cst_37 = arith.constant dense<0.000000e+00> : vector<24x64xf32>
    %85 = tpu.matmul %83, %84, %cst_37 {dimension_numbers = #tpu.dot_dimension_numbers<[1], [0], [0], [1], [0, 0, 1, 1], [], []>} : vector<24x32xbf16>, vector<32x64xbf16>, vector<24x64xf32> -> vector<24x64xf32>
    %c0_38 = arith.constant 0 : index
    %c0_39 = arith.constant 0 : index
    %86 = vector.load %arg11[%c0_38, %c0_39] : memref<1x64xf32, #tpu.memory_space<vmem>>, vector<1x64xf32>
    %87 = vector.broadcast %86 : vector<1x64xf32> to vector<24x64xf32>
    %88 = arith.addf %85, %87 : vector<24x64xf32>
    %cst_40 = arith.constant 5.000000e-01 : f32
    %89 = vector.broadcast %cst_40 : f32 to vector<24x64xf32>
    %90 = arith.mulf %89, %88 : vector<24x64xf32>
    %cst_41 = arith.constant 4.471500e-02 : f32
    %91 = vector.broadcast %cst_41 : f32 to vector<24x64xf32>
    %92 = arith.mulf %91, %88 : vector<24x64xf32>
    %93 = arith.mulf %92, %88 : vector<24x64xf32>
    %94 = arith.mulf %93, %88 : vector<24x64xf32>
    %95 = arith.addf %88, %94 : vector<24x64xf32>
    %cst_42 = arith.constant 0.797884583 : f32
    %96 = vector.broadcast %cst_42 : f32 to vector<24x64xf32>
    %97 = arith.mulf %96, %95 : vector<24x64xf32>
    %98 = math.tanh %97 : vector<24x64xf32>
    %cst_43 = arith.constant 1.000000e+00 : f32
    %99 = vector.broadcast %cst_43 : f32 to vector<24x64xf32>
    %100 = arith.addf %99, %98 : vector<24x64xf32>
    %101 = arith.mulf %90, %100 : vector<24x64xf32>
    %102 = arith.truncf %101 : vector<24x64xf32> to vector<24x64xbf16>
    %c0_44 = arith.constant 0 : index
    %c0_45 = arith.constant 0 : index
    %103 = vector.load %arg13[%c0_44, %c0_45] : memref<1x32xf32, #tpu.memory_space<vmem>>, vector<1x32xf32>
    %104 = vector.broadcast %103 : vector<1x32xf32> to vector<24x32xf32>
    %105 = arith.addf %58, %104 : vector<24x32xf32>
    %c0_46 = arith.constant 0 : index
    %c0_47 = arith.constant 0 : index
    %106 = vector.load %arg12[%c0_46, %c0_47] : memref<64x32xbf16, #tpu.memory_space<vmem>>, vector<64x32xbf16>
    %cst_48 = arith.constant dense<0.000000e+00> : vector<24x32xf32>
    %107 = tpu.matmul %102, %106, %cst_48 {dimension_numbers = #tpu.dot_dimension_numbers<[1], [0], [0], [1], [0, 0, 1, 1], [], []>} : vector<24x64xbf16>, vector<64x32xbf16>, vector<24x32xf32> -> vector<24x32xf32>
    %108 = arith.addf %105, %107 : vector<24x32xf32>
    %c0_49 = arith.constant 0 : index
    %c0_50 = arith.constant 0 : index
    %c0_51 = arith.constant 0 : index
    %109 = vector.load %arg14[%c0_49, %c0_50, %c0_51] : memref<1x24x32xf32, #tpu.memory_space<vmem>>, vector<1x24x32xf32>
    %110 = vector.shape_cast %109 : vector<1x24x32xf32> to vector<24x32xf32>
    %111 = vector.shape_cast %108 : vector<24x32xf32> to vector<1x24x32xf32>
    tpu.vector_store %arg14[%c0_49, %c0_50, %c0_51], %111 {strides = array<i32>} : memref<1x24x32xf32, #tpu.memory_space<vmem>>, vector<1x24x32xf32>,
    return
  }
  func.func @transform_0(%arg0: i32, %arg1: i32) -> (i32, i32, i32) {
    %c0_i32 = arith.constant 0 : i32
    %c0_i32_0 = arith.constant 0 : i32
    return %arg0, %arg1, %c0_i32 : i32, i32, i32
  }
  func.func @transform_1(%arg0: i32, %arg1: i32) -> (i32, i32, i32) {
    %c0_i32 = arith.constant 0 : i32
    %c0_i32_0 = arith.constant 0 : i32
    return %arg0, %arg1, %c0_i32 : i32, i32, i32
  }
  func.func @transform_2(%arg0: i32, %arg1: i32) -> (i32, i32, i32) {
    %c0_i32 = arith.constant 0 : i32
    %c0_i32_0 = arith.constant 0 : i32
    %c0_i32_1 = arith.constant 0 : i32
    return %arg0, %c0_i32, %c0_i32_0 : i32, i32, i32
  }
  func.func @transform_3(%arg0: i32, %arg1: i32) -> (i32, i32, i32) {
    %c0_i32 = arith.constant 0 : i32
    %c0_i32_0 = arith.constant 0 : i32
    %c0_i32_1 = arith.constant 0 : i32
    return %arg0, %c0_i32, %c0_i32_0 : i32, i32, i32
  }
  func.func @transform_4(%arg0: i32, %arg1: i32) -> (i32, i32) {
    %c0_i32 = arith.constant 0 : i32
    %c0_i32_0 = arith.constant 0 : i32
    %c0_i32_1 = arith.constant 0 : i32
    return %c0_i32, %c0_i32_0 : i32, i32
  }
  func.func @transform_5(%arg0: i32, %arg1: i32) -> (i32, i32) {
    %c0_i32 = arith.constant 0 : i32
    %c0_i32_0 = arith.constant 0 : i32
    %c0_i32_1 = arith.constant 0 : i32
    return %c0_i32, %c0_i32_0 : i32, i32
  }
  func.func @transform_6(%arg0: i32, %arg1: i32) -> (i32, i32) {
    %c0_i32 = arith.constant 0 : i32
    %c0_i32_0 = arith.constant 0 : i32
    %c0_i32_1 = arith.constant 0 : i32
    return %c0_i32, %c0_i32_0 : i32, i32
  }
  func.func @transform_7(%arg0: i32, %arg1: i32) -> (i32, i32) {
    %c0_i32 = arith.constant 0 : i32
    %c0_i32_0 = arith.constant 0 : i32
    %c0_i32_1 = arith.constant 0 : i32
    return %c0_i32, %c0_i32_0 : i32, i32
  }
  func.func @transform_8(%arg0: i32, %arg1: i32) -> (i32, i32) {
    %c0_i32 = arith.constant 0 : i32
    %c0_i32_0 = arith.constant 0 : i32
    %c0_i32_1 = arith.constant 0 : i32
    return %c0_i32, %c0_i32_0 : i32, i32
  }
  func.func @transform_9(%arg0: i32, %arg1: i32) -> (i32, i32) {
    %c0_i32 = arith.constant 0 : i32
    %c0_i32_0 = arith.constant 0 : i32
    %c0_i32_1 = arith.constant 0 : i32
    return %c0_i32, %c0_i32_0 : i32, i32
  }
  func.func @transform_10(%arg0: i32, %arg1: i32) -> (i32, i32) {
    %c0_i32 = arith.constant 0 : i32
    %c0_i32_0 = arith.constant 0 : i32
    %c0_i32_1 = arith.constant 0 : i32
    return %c0_i32, %c0_i32_0 : i32, i32
  }
  func.func @transform_11(%arg0: i32, %arg1: i32) -> (i32, i32) {
    %c0_i32 = arith.constant 0 : i32
    %c0_i32_0 = arith.constant 0 : i32
    %c0_i32_1 = arith.constant 0 : i32
    return %c0_i32, %c0_i32_0 : i32, i32
  }
  func.func @transform_12(%arg0: i32, %arg1: i32) -> (i32, i32, i32) {
    %c0_i32 = arith.constant 0 : i32
    %c0_i32_0 = arith.constant 0 : i32
    return %arg0, %arg1, %c0_i32 : i32, i32, i32
  }
}

module attributes {stable_mosaic.version = 11 : i64} {
  func.func @head_kernel(%arg0: i32, %arg1: memref<8x32xf32, #tpu.memory_space<vmem>>, %arg2: memref<1x32xf32, #tpu.memory_space<vmem>>, %arg3: memref<1x32xf32, #tpu.memory_space<vmem>>, %arg4: memref<32x128xbf16, #tpu.memory_space<vmem>>, %arg5: memref<1x128xf32, #tpu.memory_space<vmem>>, %arg6: memref<8x128xf32, #tpu.memory_space<vmem>>) attributes {dimension_semantics = [#tpu.dimension_semantics<parallel>], iteration_bounds = array<i64: 1>, scalar_prefetch = 0 : i64, scratch_operands = 0 : i64, tpu.core_type = #tpu.core_type<tc>, window_params = [{transform_indices = @transform_0, window_bounds = array<i64: 8, 32>}, {pipeline_mode = #tpu.pipeline_mode<synchronous>, transform_indices = @transform_1, window_bounds = array<i64: 1, 32>}, {pipeline_mode = #tpu.pipeline_mode<synchronous>, transform_indices = @transform_2, window_bounds = array<i64: 1, 32>}, {pipeline_mode = #tpu.pipeline_mode<synchronous>, transform_indices = @transform_3, window_bounds = array<i64: 32, 128>}, {pipeline_mode = #tpu.pipeline_mode<synchronous>, transform_indices = @transform_4, window_bounds = array<i64: 1, 128>}, {transform_indices = @transform_5, window_bounds = array<i64: 8, 128>}]} {
    %c0 = arith.constant 0 : index
    %c0_0 = arith.constant 0 : index
    %0 = vector.load %arg1[%c0, %c0_0] : memref<8x32xf32, #tpu.memory_space<vmem>>, vector<8x32xf32>
    %c0_1 = arith.constant 0 : index
    %c0_2 = arith.constant 0 : index
    %1 = vector.load %arg2[%c0_1, %c0_2] : memref<1x32xf32, #tpu.memory_space<vmem>>, vector<1x32xf32>
    %c0_3 = arith.constant 0 : index
    %c0_4 = arith.constant 0 : index
    %2 = vector.load %arg3[%c0_3, %c0_4] : memref<1x32xf32, #tpu.memory_space<vmem>>, vector<1x32xf32>
    %cst = arith.constant dense<0.000000e+00> : vector<8xf32>
    %3 = vector.multi_reduction <add>, %0, %cst [1] : vector<8x32xf32> to vector<8xf32>
    %4 = vector.shape_cast %3 : vector<8xf32> to vector<8x1xf32>
    %cst_5 = arith.constant 3.200000e+01 : f32
    %5 = vector.broadcast %cst_5 : f32 to vector<8x1xf32>
    %6 = arith.divf %4, %5 : vector<8x1xf32>
    %7 = vector.broadcast %6 : vector<8x1xf32> to vector<8x32xf32>
    %8 = arith.subf %0, %7 : vector<8x32xf32>
    %9 = arith.mulf %8, %8 : vector<8x32xf32>
    %cst_6 = arith.constant dense<0.000000e+00> : vector<8xf32>
    %10 = vector.multi_reduction <add>, %9, %cst_6 [1] : vector<8x32xf32> to vector<8xf32>
    %11 = vector.shape_cast %10 : vector<8xf32> to vector<8x1xf32>
    %cst_7 = arith.constant 3.200000e+01 : f32
    %12 = vector.broadcast %cst_7 : f32 to vector<8x1xf32>
    %13 = arith.divf %11, %12 : vector<8x1xf32>
    %14 = vector.broadcast %6 : vector<8x1xf32> to vector<8x32xf32>
    %15 = arith.subf %0, %14 : vector<8x32xf32>
    %cst_8 = arith.constant 9.99999974E-6 : f32
    %16 = vector.broadcast %cst_8 : f32 to vector<8x1xf32>
    %17 = arith.addf %13, %16 : vector<8x1xf32>
    %18 = math.rsqrt %17 : vector<8x1xf32>
    %19 = vector.broadcast %18 : vector<8x1xf32> to vector<8x32xf32>
    %20 = arith.mulf %15, %19 : vector<8x32xf32>
    %21 = vector.broadcast %1 : vector<1x32xf32> to vector<8x32xf32>
    %22 = arith.mulf %20, %21 : vector<8x32xf32>
    %23 = vector.broadcast %2 : vector<1x32xf32> to vector<8x32xf32>
    %24 = arith.addf %22, %23 : vector<8x32xf32>
    %25 = arith.truncf %24 : vector<8x32xf32> to vector<8x32xbf16>
    %c0_9 = arith.constant 0 : index
    %c0_10 = arith.constant 0 : index
    %26 = vector.load %arg4[%c0_9, %c0_10] : memref<32x128xbf16, #tpu.memory_space<vmem>>, vector<32x128xbf16>
    %cst_11 = arith.constant dense<0.000000e+00> : vector<8x128xf32>
    %27 = tpu.matmul %25, %26, %cst_11 {dimension_numbers = #tpu.dot_dimension_numbers<[1], [0], [0], [1], [0, 0, 1, 1], [], []>} : vector<8x32xbf16>, vector<32x128xbf16>, vector<8x128xf32> -> vector<8x128xf32>
    %c0_12 = arith.constant 0 : index
    %c0_13 = arith.constant 0 : index
    %28 = vector.load %arg5[%c0_12, %c0_13] : memref<1x128xf32, #tpu.memory_space<vmem>>, vector<1x128xf32>
    %29 = vector.broadcast %28 : vector<1x128xf32> to vector<8x128xf32>
    %30 = arith.addf %27, %29 : vector<8x128xf32>
    %c0_14 = arith.constant 0 : index
    %c0_15 = arith.constant 0 : index
    %31 = vector.load %arg6[%c0_14, %c0_15] : memref<8x128xf32, #tpu.memory_space<vmem>>, vector<8x128xf32>
    tpu.vector_store %arg6[%c0_14, %c0_15], %30 {strides = array<i32>} : memref<8x128xf32, #tpu.memory_space<vmem>>, vector<8x128xf32>,
    return
  }
  func.func @transform_0(%arg0: i32) -> (i32, i32) {
    %c0_i32 = arith.constant 0 : i32
    %c0_i32_0 = arith.constant 0 : i32
    return %arg0, %c0_i32 : i32, i32
  }
  func.func @transform_1(%arg0: i32) -> (i32, i32) {
    %c0_i32 = arith.constant 0 : i32
    %c0_i32_0 = arith.constant 0 : i32
    %c0_i32_1 = arith.constant 0 : i32
    return %c0_i32, %c0_i32_0 : i32, i32
  }
  func.func @transform_2(%arg0: i32) -> (i32, i32) {
    %c0_i32 = arith.constant 0 : i32
    %c0_i32_0 = arith.constant 0 : i32
    %c0_i32_1 = arith.constant 0 : i32
    return %c0_i32, %c0_i32_0 : i32, i32
  }
  func.func @transform_3(%arg0: i32) -> (i32, i32) {
    %c0_i32 = arith.constant 0 : i32
    %c0_i32_0 = arith.constant 0 : i32
    %c0_i32_1 = arith.constant 0 : i32
    return %c0_i32, %c0_i32_0 : i32, i32
  }
  func.func @transform_4(%arg0: i32) -> (i32, i32) {
    %c0_i32 = arith.constant 0 : i32
    %c0_i32_0 = arith.constant 0 : i32
    %c0_i32_1 = arith.constant 0 : i32
    return %c0_i32, %c0_i32_0 : i32, i32
  }
  func.func @transform_5(%arg0: i32) -> (i32, i32) {
    %c0_i32 = arith.constant 0 : i32
    %c0_i32_0 = arith.constant 0 : i32
    return %arg0, %c0_i32 : i32, i32
  }
}

</mosaic_0001>

<bundles_post_ra>
// kernel: vit_forward.6
= control target key start
LH: loop header
LB: loop body
LE: loop exit
PB: predicated region body
PF: predicated region fallthrough
CT: control target
= control target key end

     0   :  { %s580_s15 = smov 0   ;;  %s582_s16 = smov 0   ;;  %s634_s0 = inlined_call_operand.vmem [shape: bf16[2,16,64], index: 0, kind: input, shape index: {}]   ;;  %s635_s1 = inlined_call_operand.vmem [shape: f32[1,16,32], index: 1, kind: input, shape index: {}]   ;;  %s636_s2 = inlined_call_operand.vmem [shape: bf16[64,32], index: 2, kind: input, shape index: {}]   ;;  %s637_s3 = inlined_call_operand.vmem [shape: f32[1,32], index: 3, kind: input, shape index: {}]   ;;  %s638_s4 = inlined_call_operand.vmem [shape: f32[2,16,32], index: 4, kind: output, shape index: {}]  }
   0x1   :  { %s584_s17 = smov 0  }
   0x2 LB: > { %s26_s18 = sadd.s32 1, %s547_s16  ;;  %p465_p0 = scmp.ge.s32.totalorder %s551_s17, 1  ;;  %s551_s17 = sphi %s584_s17, %s14_s17   ;;  %s547_s16 = sphi %s582_s16, %s640_s16   ;;  %s543_s15 = sphi %s580_s15, %s639_s15  }
   0x3   : > { %p28_p1 = scmp.ge.s32.totalorder %s26_s18, 2  ;;  %p194_p2 = scmp.lt.s32.totalorder %s551_s17, 3 }
   0x5   : > { %s642_s18 = smov (%p28_p1, %s26_s18), 0  ;;  %p195_p3 = pnand %p465_p0, %p194_p2 }
   0x6   : > { %v524_v0 = vld [vmem:[%s636_s2] sm:$0xff] (!%p195_p3)   ;;  %v553_v1 = vmov (!%p195_p3), 0.0   ;;  %v525_v2 = vld [vmem:[%s636_s2 + $0x8] sm:$0xff] (!%p195_p3)   ;;  %vm554_vm0 = vmmov (!%p195_p3), 0   ;;  %p234_p4 = scmp.lt.s32.totalorder (!%p195_p3), %s543_s15, 1  ;;  %v526_v3 = vld [vmem:[%s636_s2 + $0x10] sm:$0xff] (!%p195_p3)  }
   0x7   : > { %198 = sbr.rel (%p195_p3) target bundleno = 242 (0xf2), region = 36  ;;  %486 = vmatprep.subr.bf16.mxu0 (!%p195_p3), %v553_v1  ;;  %494 = vmatprep.mubr.msk.bf16.mxu0 (!%p195_p3), %vm554_vm0, %v553_v1  ;;  %v527_v4 = vld [vmem:[%s636_s2 + $0x18] sm:$0xff] (!%p195_p3)   ;;  %vm306_vm1 = vcmask (!%p195_p3), 523264   ;;  %v470_v6 = vld [vmem:[%s637_s3] ss:$0 sm:$0xff] (!%p195_p3)  ;;  %vm355_vm2 = vcmask (!%p195_p3), 261120  }
   0x8   : > { %487 = vmatpush3.bf16.msra.mxu0 (!%p195_p3), %v524_v0  ;;  %v351_v8 = vld [vmem:[%s635_s1] sm:$0xff] (!%p195_p3)  ;;  %v352_v12 = vld [vmem:[%s635_s1 + $0x8] sm:$0xff] (!%p195_p3) }
   0x9   : > { %488 = vmatprep.subr.bf16.mxu0 (!%p195_p3), %v553_v1 }
   0xc   : > { %489 = vmatpush3.bf16.msra.mxu0 (!%p195_p3), %v525_v2 }
   0xd   : > { %490 = vmatprep.subr.bf16.mxu0 (!%p195_p3), %v553_v1 }
   0xe   : > { %s644_s15 = smov (!%p234_p4, %s543_s15), 1 }
   0xf   : > { %s479_s25 = sshll.u32 %s644_s15, 3  ;;  %s480_s7 = sshll.u32 %s644_s15, 4 }
  0x10   : > { %s241_s28 = scalar_lea.vmem %s634_s0, %s479_s25  ;;  %491 = vmatpush3.bf16.msra.mxu0 %v526_v3  ;;  %s257_s12 = scalar_lea.vmem %s638_s4, %s480_s7 }
  0x11   : > { %492 = vmatprep.subr.bf16.mxu0 %v553_v1  ;;  %v528_v5 = vld [vmem:[%s241_s28] sm:$0xff]  }
  0x14   : > { %493 = vmatpush3.bf16.msra.mxu0 %v527_v4 }
  0x17   : > { %495 = vmatmul.mubr.msk.bf16.vlgmr.msra.gmra.mrb[0].mxu0 %vm306_vm1, %v528_v5 }
  0xea   : > { %v344_v7 = vpop.f32.mrb[0].mxu0 }
  0xeb   : > { %v345_v9 = vadd.f32 %v470_v6, %v344_v7  ;;  %v496_v10 = vpop.f32.mrb[1].mxu0 }
  0xec   : > { %v347_v11 = vpop.f32.mrb[2].mxu0 }
  0xed   : > { %v353_v13 = vadd.f32 %v351_v8, %v345_v9  ;;  %v348_v14 = vadd.f32 %v470_v6, %v347_v11  ;;  %v497_v15 = vpop.f32.mrb[3].mxu0 }
  0xef   : > { %356 = vst.msk [vmem:[%s257_s12] sm:$0xff] %vm355_vm2, %v353_v13  ;;  %v354_v16 = vadd.f32 %v352_v12, %v348_v14 }
  0xf1   : > { %357 = vst.msk [vmem:[%s257_s12 + $0x8] sm:$0xff] %vm355_vm2, %v354_v16 }
  0xf2 PF: > { %s14_s17 = sadd.s32 1, %s551_s17   ;;  %s639_s15 = smov %s547_s16 }
  0xf3   : > { %p11_p5 = scmp.ge.s32.totalorder %s14_s17, 4   ;;  %s640_s16 = smov %s642_s18 }
  0xf5   :  { %13 = sbr.rel (!%p11_p5) target bundleno = 2 (0x2), region = 69 }

// kernel: vit_forward.7
= control target key start
LH: loop header
LB: loop body
LE: loop exit
PB: predicated region body
PF: predicated region fallthrough
CT: control target
= control target key end

     0   :  { %s835_s21 = smov 0   ;;  %s837_s22 = smov 0   ;;  %s907_s0 = inlined_call_operand.vmem [shape: f32[2,24,32], index: 0, kind: input, shape index: {}]   ;;  %s908_s1 = inlined_call_operand.vmem [shape: f32[1,32], index: 1, kind: input, shape index: {}]   ;;  %s909_s2 = inlined_call_operand.vmem [shape: f32[1,32], index: 2, kind: input, shape index: {}]   ;;  %s910_s3 = inlined_call_operand.vmem [shape: bf16[32,96], index: 3, kind: input, shape index: {}]   ;;  %s911_s4 = inlined_call_operand.vmem [shape: bf16[2,24,32], index: 4, kind: output, shape index: {0}]   ;;  %s912_s5 = inlined_call_operand.vmem [shape: bf16[2,24,32], index: 5, kind: output, shape index: {1}]   ;;  %s913_s6 = inlined_call_operand.vmem [shape: bf16[2,24,32], index: 6, kind: output, shape index: {2}]  }
   0x1   :  { %s839_s23 = smov 0  }
   0x2 LB: > { %s29_s24 = sadd.s32 1, %s792_s22  ;;  %p707_p0 = scmp.ge.s32.totalorder %s796_s23, 1  ;;  %s796_s23 = sphi %s839_s23, %s17_s23   ;;  %s792_s22 = sphi %s837_s22, %s915_s22   ;;  %s788_s21 = sphi %s835_s21, %s914_s21  }
   0x3   : > { %p31_p1 = scmp.ge.s32.totalorder %s29_s24, 2  ;;  %p242_p2 = scmp.lt.s32.totalorder %s796_s23, 3 }
   0x5   : > { %s917_s24 = smov (%p31_p1, %s29_s24), 0  ;;  %p243_p3 = pnand %p707_p0, %p242_p2 }
   0x6   : > { %p299_p4 = scmp.lt.s32.totalorder (!%p243_p3), %s788_s21, 1  ;;  %vm344_vm0 = vcmask (!%p243_p3), 261120   ;;  %v766_v21 = vld [vmem:[%s910_s3] sm:$0xff] (!%p243_p3)   ;;  %v767_v22 = vld [vmem:[%s910_s3 + $0x8] sm:$0xff] (!%p243_p3)   ;;  %vm488_vm1 = vcmask (!%p243_p3), 257024   ;;  %s798_s17 = smov (!%p243_p3), 96  }
   0x7   : > { %246 = sbr.rel (%p243_p3) target bundleno = 682 (0x2aa), region = 36  ;;  %730 = vmatprep.subr.bf16.mxu0 (!%p243_p3), %v766_v21  ;;  %v712_v34 = vld [vmem:[%s908_s1] ss:$0 sm:$0xff] (!%p243_p3)  ;;  %s799_s18 = smov (!%p243_p3), 64  }
   0x8   : > { %731 = vmatpush3.bf16.msra.mxu0 (!%p243_p3), %v766_v21  ;;  %v713_v40 = vld [vmem:[%s909_s2] ss:$0 sm:$0xff] (!%p243_p3) }
   0x9   : > { %732 = vmatprep.subr.bf16.mxu0 (!%p243_p3), %v767_v22 }
   0xc   : > { %733 = vmatpush3.bf16.msra.mxu0 (!%p243_p3), %v767_v22 }
   0xe   : > { %s919_s21 = smov (!%p299_p4, %s788_s21), 1 }
   0xf   : > { %s738_s25 = smul.u32 24, %s919_s21 }
  0x10   : > { %s739_s13 = smul.u32 12, %s919_s21 }
  0x11   : > { %s306_s28 = scalar_lea.vmem %s907_s0, %s738_s25 }
  0x12   : > { %v339_v0 = vld [vmem:[%s306_s28] sm:$0xff]  ;;  %v341_v1 = vld [vmem:[%s306_s28 + $0x10] sm:$0xff]  ;;  %v340_v2 = vld [vmem:[%s306_s28 + $0x8] sm:$0xff]  ;;  %s316_s16 = scalar_lea.vmem %s911_s4, %s739_s13  ;;  %s326_s21 = scalar_lea.vmem %s912_s5, %s739_s13 }
  0x13   : > { %v345_v3 = vsel %vm344_vm0, %v339_v0, 0.0  ;;  %v351_v4 = vsel %vm344_vm0, %v341_v1, 0.0  ;;  %v348_v5 = vsel %vm344_vm0, %v340_v2, 0.0  ;;  %s336_s27 = scalar_lea.vmem %s913_s6, %s739_s13 }
  0x14   : > { %346 = vadd.xlane.f32.xlu0 %v345_v3  ;;  %352 = vadd.xlane.f32.xlu1 %v351_v4 }
  0x18   : > { %349 = vadd.xlane.f32.xlu0 %v348_v5 }
  0xa1   : > { %v347_v6 = vpop.xlane.xlu0 %346  ;;  %v353_v7 = vpop.xlane.xlu1 %352 }
  0xa2   : > { %v355_v8 = vmul.f32 0.03125, %v347_v6  ;;  %v357_v9 = vmul.f32 0.03125, %v353_v7 }
  0xa4   : > { %v358_v10 = vsub.f32 %v339_v0, %v355_v8  ;;  %v360_v11 = vsub.f32 %v341_v1, %v357_v9 }
  0xa5   : > { %v350_v12 = vpop.xlane.xlu0 %349 }
  0xa6   : > { %v356_v13 = vmul.f32 0.03125, %v350_v12  ;;  %v361_v14 = vmul.f32 %v358_v10, %v358_v10  ;;  %v363_v15 = vmul.f32 %v360_v11, %v360_v11 }
  0xa8   : > { %v359_v16 = vsub.f32 %v340_v2, %v356_v13  ;;  %v364_v17 = vsel %vm344_vm0, %v361_v14, 0.0  ;;  %v370_v18 = vsel %vm344_vm0, %v363_v15, 0.0 }
  0xa9   : > { %365 = vadd.xlane.f32.xlu1 %v364_v17 }
  0xaa   : > { %v362_v19 = vmul.f32 %v359_v16, %v359_v16 }
  0xac   : > { %v367_v20 = vsel %vm344_vm0, %v362_v19, 0.0 }
  0xad   : > { %371 = vadd.xlane.f32.xlu1 %v370_v18  ;;  %368 = vadd.xlane.f32.xlu0 %v367_v20 }
 0x136   : > { %v366_v23 = vpop.xlane.xlu1 %365 }
 0x137   : > { %v373_v24 = vmul.f32 0.03125, %v366_v23 }
 0x139   : > { %v376_v25 = vadd.f32 1e-05, %v373_v24 }
 0x13a   : > { %v372_v26 = vpop.xlane.xlu1 %371  ;;  %v369_v27 = vpop.xlane.xlu0 %368 }
 0x13b   : > { %768 = vrsqrt.f32 %v376_v25  ;;  %v375_v28 = vmul.f32 0.03125, %v372_v26  ;;  %v374_v29 = vmul.f32 0.03125, %v369_v27 }
 0x13d   : > { %v378_v30 = vadd.f32 1e-05, %v375_v28  ;;  %v377_v31 = vadd.f32 1e-05, %v374_v29 }
 0x13f   : > { %770 = vrsqrt.f32 %v378_v30 }
 0x140   : > { %772 = vrsqrt.f32 %v377_v31 }
 0x145   : > { %v769_v32 = vpop.eup %768 }
 0x146   : > { %v382_v33 = vmul.f32 %v769_v32, %v358_v10 }
 0x148   : > { %v391_v39 = vmul.f32 %v712_v34, %v382_v33 }
 0x149   : > { %v771_v35 = vpop.eup %770 }
 0x14a   : > { %v773_v36 = vpop.eup %772  ;;  %v384_v37 = vmul.f32 %v771_v35, %v360_v11  ;;  %v400_v44 = vadd.f32 %v713_v40, %v391_v39 }
 0x14b   : > { %v383_v38 = vmul.f32 %v773_v36, %v359_v16 }
 0x14c   : > { %v393_v41 = vmul.f32 %v712_v34, %v384_v37 }
 0x14d   : > { %v392_v42 = vmul.f32 %v712_v34, %v383_v38 }
 0x14e   : > { %v402_v43 = vadd.f32 %v713_v40, %v393_v41 }
 0x14f   : > { %v401_v45 = vadd.f32 %v713_v40, %v392_v42 }
 0x150   : > { %v404_v46 = vpack.c.bf16 %v402_v43, %v402_v43 }
 0x151   : > { %v403_v47 = vpack.c.bf16 %v401_v45, %v400_v44 }
 0x153   : > { %734 = vmatprep.mubr.msk.bf16.mxu0 %vm344_vm0, %v403_v47 }
 0x154   : > { %735 = vmatmul.mubr.msk.bf16.vlgmr.msra.gmra.mrb[0].mxu0 %vm344_vm0, %v404_v46 }
 0x227   : > { %v736_v48 = vpop.f32.mrb[0].mxu0 }
 0x228   : > { %v725_v49 = vpack.c.bf16 %v736_v48, %v736_v48  ;;  %v461_v50 = vpop.f32.mrb[1].mxu0 }
 0x229   : > { %v723_v51 = vpack.c.bf16 %v461_v50, %v461_v50  ;;  %v737_v52 = vpop.f32.mrb[2].mxu0 }
 0x22a   : > { %491 = vst.msk [vmem:[%s316_s16 + $0x8] sm:$0xf] %vm488_vm1, %v725_v49  ;;  %496 = vrot.lane.b32.xlu1 %v725_v49, %s798_s17  ;;  %v464_v53 = vpop.f32.mrb[3].mxu0 }
 0x22b   : > { %489 = vst.msk [vmem:[%s316_s16] sm:$0xf] %vm488_vm1, %v723_v51  ;;  %v724_v54 = vpack.c.bf16 %v464_v53, %v464_v53  ;;  %492 = vrot.lane.b32.xlu0 %v723_v51, %s798_s17 }
 0x22d   : > { %490 = vst.msk [vmem:[%s316_s16 + $0x4] sm:$0xf] %vm488_vm1, %v724_v54 }
 0x22e   : > { %504 = vrot.lane.b32.xlu1 %v723_v51, %s799_s18 }
 0x22f   : > { %506 = vrot.lane.b32.xlu0 %v724_v54, %s799_s18 }
 0x232   : > { %494 = vrot.lane.b32.xlu1 %v724_v54, %s798_s17 }
 0x236   : > { %508 = vrot.lane.b32.xlu1 %v725_v49, %s799_s18 }
 0x29c   : > { %v497_v55 = vpop.permute.xlu1 %496 }
 0x29d   : > { %503 = vst.msk [vmem:[%s326_s21 + $0x8] sm:$0xf] %vm488_vm1, %v497_v55  ;;  %v493_v56 = vpop.permute.xlu0 %492 }
 0x29e   : > { %501 = vst.msk [vmem:[%s326_s21] sm:$0xf] %vm488_vm1, %v493_v56 }
 0x2a0   : > { %v505_v57 = vpop.permute.xlu1 %504 }
 0x2a1   : > { %513 = vst.msk [vmem:[%s336_s27] sm:$0xf] %vm488_vm1, %v505_v57  ;;  %v507_v58 = vpop.permute.xlu0 %506 }
 0x2a2   : > { %514 = vst.msk [vmem:[%s336_s27 + $0x4] sm:$0xf] %vm488_vm1, %v507_v58 }
 0x2a4   : > { %v495_v59 = vpop.permute.xlu1 %494 }
 0x2a5   : > { %502 = vst.msk [vmem:[%s326_s21 + $0x4] sm:$0xf] %vm488_vm1, %v495_v59 }
 0x2a8   : > { %v509_v60 = vpop.permute.xlu1 %508 }
 0x2a9   : > { %515 = vst.msk [vmem:[%s336_s27 + $0x8] sm:$0xf] %vm488_vm1, %v509_v60 }
 0x2aa PF: > { %s17_s23 = sadd.s32 1, %s796_s23   ;;  %s914_s21 = smov %s792_s22 }
 0x2ab   : > { %p14_p5 = scmp.ge.s32.totalorder %s17_s23, 4   ;;  %s915_s22 = smov %s917_s24 }
 0x2ad   :  { %16 = sbr.rel (!%p14_p5) target bundleno = 2 (0x2), region = 90 }

// kernel: vit_forward.11
= control target key start
LH: loop header
LB: loop body
LE: loop exit
PB: predicated region body
PF: predicated region fallthrough
CT: control target
= control target key end

     0   :  { %vm24_vm0 = vcmask 261120   ;;  %v148_v8 = vmov 0.0   ;;  %vm149_vm1 = vmmov 0   ;;  %s204_s0 = inlined_call_operand.vmem [shape: f32[8,32], index: 0, kind: input, shape index: {}]   ;;  %s205_s3 = inlined_call_operand.vmem [shape: bf16[32,128], index: 3, kind: input, shape index: {}]   ;;  %s206_s1 = inlined_call_operand.vmem [shape: f32[1,32], index: 1, kind: input, shape index: {}]   ;;  %s207_s2 = inlined_call_operand.vmem [shape: f32[1,32], index: 2, kind: input, shape index: {}]   ;;  %s208_s4 = inlined_call_operand.vmem [shape: f32[1,128], index: 4, kind: input, shape index: {}]   ;;  %s209_s5 = inlined_call_operand.vmem [shape: f32[8,128], index: 5, kind: output, shape index: {}]  }
   0x1   :  { %v21_v0 = vld [vmem:[%s204_s0] sm:$0xff]  ;;  %134 = vmatprep.subr.bf16.mxu0 %v148_v8  ;;  %v145_v9 = vld [vmem:[%s205_s3 + $0x8] sm:$0xff]   ;;  %138 = vmatprep.mubr.msk.bf16.mxu0 %vm149_vm1, %v148_v8 }
   0x2   :  { %v25_v1 = vsel %vm24_vm0, %v21_v0, 0.0  ;;  %v144_v7 = vld [vmem:[%s205_s3] sm:$0xff]  }
   0x3   :  { %26 = vadd.xlane.f32.xlu0 %v25_v1  ;;  %135 = vmatpush3.bf16.msra.mxu0 %v144_v7  ;;  %v125_v14 = vld [vmem:[%s206_s1] ss:$0 sm:$0xff] }
   0x4   :  { %136 = vmatprep.subr.bf16.mxu0 %v148_v8  ;;  %v126_v16 = vld [vmem:[%s207_s2] ss:$0 sm:$0xff] }
   0x5   :  { %v127_v20 = vld [vmem:[%s208_s4] ss:$0 sm:$0xff] }
   0x7   :  { %137 = vmatpush3.bf16.msra.mxu0 %v145_v9 }
  0x90   :  { %v27_v2 = vpop.xlane.xlu0 %26 }
  0x91   :  { %v29_v3 = vmul.f32 0.03125, %v27_v2 }
  0x93   :  { %v30_v4 = vsub.f32 %v21_v0, %v29_v3 }
  0x95   :  { %v31_v5 = vmul.f32 %v30_v4, %v30_v4 }
  0x97   :  { %v32_v6 = vsel %vm24_vm0, %v31_v5, 0.0 }
  0x98   :  { %33 = vadd.xlane.f32.xlu0 %v32_v6 }
 0x125   :  { %v34_v10 = vpop.xlane.xlu0 %33 }
 0x126   :  { %v35_v11 = vmul.f32 0.03125, %v34_v10 }
 0x128   :  { %v36_v12 = vadd.f32 1e-05, %v35_v11 }
 0x12a   :  { %146 = vrsqrt.f32 %v36_v12 }
 0x134   :  { %v147_v13 = vpop.eup %146 }
 0x135   :  { %v38_v15 = vmul.f32 %v147_v13, %v30_v4 }
 0x137   :  { %v45_v17 = vmul.f32 %v125_v14, %v38_v15 }
 0x139   :  { %v52_v18 = vadd.f32 %v126_v16, %v45_v17 }
 0x13b   :  { %v53_v19 = vpack.c.bf16 %v52_v18, %v52_v18 }
 0x13d   :  { %139 = vmatmul.mubr.msk.bf16.vlgmr.msra.gmra.mrb[0].mxu0 %vm24_vm0, %v53_v19 }
 0x210   :  { %v114_v21 = vpop.f32.mrb[0].mxu0 }
 0x211   :  { %v115_v22 = vadd.f32 %v127_v20, %v114_v21  ;;  %v140_v23 = vpop.f32.mrb[1].mxu0 }
 0x212   :  { %v117_v24 = vpop.f32.mrb[2].mxu0 }
 0x213   :  { %120 = vst [vmem:[%s209_s5] sm:$0xff] %v115_v22  ;;  %v141_v25 = vpop.f32.mrb[3].mxu0 }

// kernel: vit_forward.8
= control target key start
LH: loop header
LB: loop body
LE: loop exit
PB: predicated region body
PF: predicated region fallthrough
CT: control target
= control target key end

     0   :  { %s1757_s21 = smov 0   ;;  %s1759_s22 = smov 0   ;;  %s1925_s0 = inlined_call_operand.vmem [shape: f32[2,24,32], index: 0, kind: input, shape index: {}]   ;;  %s1926_s1 = inlined_call_operand.vmem [shape: bf16[2,24,32], index: 1, kind: input, shape index: {}]   ;;  %s1927_s2 = inlined_call_operand.vmem [shape: bf16[2,24,32], index: 2, kind: input, shape index: {}]   ;;  %s1928_s3 = inlined_call_operand.vmem [shape: bf16[2,24,32], index: 3, kind: input, shape index: {}]   ;;  %s1929_s4 = inlined_call_operand.vmem [shape: bf16[32,32], index: 4, kind: input, shape index: {}]   ;;  %s1930_s5 = inlined_call_operand.vmem [shape: f32[1,32], index: 5, kind: input, shape index: {}]   ;;  %s1931_s6 = inlined_call_operand.vmem [shape: f32[1,32], index: 6, kind: input, shape index: {}]   ;;  %s1932_s7 = inlined_call_operand.vmem [shape: f32[1,32], index: 7, kind: input, shape index: {}]   ;;  %s1933_s8 = inlined_call_operand.vmem [shape: bf16[32,64], index: 8, kind: input, shape index: {}]   ;;  %s1934_s9 = inlined_call_operand.vmem [shape: f32[1,64], index: 9, kind: input, shape index: {}]   ;;  %s1935_s10 = inlined_call_operand.vmem [shape: bf16[64,32], index: 10, kind: input, shape index: {}]   ;;  %s1936_s11 = inlined_call_operand.vmem [shape: f32[1,32], index: 11, kind: input, shape index: {}]   ;;  %s1937_s12 = inlined_call_operand.vmem [shape: f32[2,24,32], index: 12, kind: output, shape index: {}]  }
   0x1   :  { %s1761_s23 = smov 0  }
   0x2 LB: > { %s34_s24 = sadd.s32 1, %s1685_s22  ;;  %p1445_p0 = scmp.ge.s32.totalorder %s1689_s23, 1  ;;  %s1689_s23 = sphi %s1761_s23, %s22_s23   ;;  %s1685_s22 = sphi %s1759_s22, %s1939_s22   ;;  %s1681_s21 = sphi %s1757_s21, %s1938_s21  }
   0x3   : > { %p36_p1 = scmp.ge.s32.totalorder %s34_s24, 2  ;;  %p420_p2 = scmp.lt.s32.totalorder %s1689_s23, 3 }
   0x5   : > { %s1941_s24 = smov (%p36_p1, %s34_s24), 0  ;;  %p421_p3 = pnand %p1445_p0, %p420_p2 }
   0x6   : > { %p490_p4 = scmp.lt.s32.totalorder (!%p421_p3), %s1681_s21, 1  ;;  %vm566_vm0 = vcmask (!%p421_p3), 130048   ;;  %s1691_s14 = smov (!%p421_p3), 112   ;;  %v546_v12 = vlaneseq (!%p421_p3)  ;;  %vm630_vm2 = vcmask (!%p421_p3), 195584   ;;  %vm681_vm3 = vcmask (!%p421_p3), 1043456  }
   0x7   : > { %424 = sbr.rel (%p421_p3) target bundleno = 2012 (0x7dc), region = 68  ;;  %vm1042_vm4 = vcmask (!%p421_p3), 261120   ;;  %vm1251_vm5 = vcmask (!%p421_p3), 523264  }
   0x8   : > { %v547_v13 = vand.u32 (!%p421_p3), 127, %v546_v12 }
   0xa   : > { %vm548_vm1 = vcmp.lt.s32.totalorder (!%p421_p3), %v547_v13, 17 }
   0xe   : > { %s1943_s21 = smov (!%p490_p4, %s1681_s21), 1 }
   0xf   : > { %s1778_s25 = smul.u32 12, %s1943_s21 }
  0x10   : > { %s1590_s26 = smul.u32 24, %s1943_s21 }
  0x11   : > { %s513_s28 = scalar_lea.vmem %s1927_s2, %s1778_s25  ;;  %s507_s13 = scalar_lea.vmem %s1926_s1, %s1778_s25 }
  0x12   : > { %v1617_v0 = vld [vmem:[%s513_s28] sm:$0xff]   ;;  %v1618_v1 = vld [vmem:[%s513_s28 + $0x8] ss:$0 sps:$4 sm:$0xff]   ;;  %s518_s17 = scalar_lea.vmem %s1928_s3, %s1778_s25  ;;  %s527_s28 = scalar_lea.vmem %s1937_s12, %s1590_s26 }
  0x13   : > { %1584 = vmatprep.subr.msk.bf16.mxu0 %vm566_vm0, %v1617_v0  ;;  %v574_v2 = vsel %vm566_vm0, %v1617_v0, 0  ;;  %v1619_v3 = vld [vmem:[%s507_s13] sm:$0xff]   ;;  %808 = vrot.lane.b32.xlu0 %v1617_v0, %s1691_s14  ;;  %v1620_v4 = vld [vmem:[%s507_s13 + $0x8] ss:$0 sps:$4 sm:$0xff]   ;;  %v577_v5 = vsel %vm566_vm0, %v1618_v1, 0  ;;  %s497_s13 = scalar_lea.vmem %s1925_s0, %s1590_s26 }
  0x14   : > { %1521 = vmatpush3.bf16.xpose.msra.mxu0 %v574_v2  ;;  %1524 = vmatprep.mubr.msk.bf16.mxu0 %vm566_vm0, %v1619_v3  ;;  %v1621_v49 = vld [vmem:[%s518_s17] sm:$0xff]   ;;  %v1622_v50 = vld [vmem:[%s518_s17 + $0x8] ss:$0 sps:$4 sm:$0xff]  }
  0x15   : > { %1585 = vmatprep.subr.msk.bf16.mxu0 %vm566_vm0, %v1618_v1  ;;  %804 = vrot.lane.b32.xlu1 %v1619_v3, %s1691_s14  ;;  %v683_v51 = vsel %vm681_vm3, %v1622_v50, 0 }
  0x16   : > { %1528 = vmatprep.subr.bf16.mxu1 %v1621_v49 }
  0x17   : > { %810 = vrot.lane.b32.xlu0 %v1618_v1, %s1691_s14  ;;  %1529 = vmatpush3.bf16.msra.mxu1 %v1621_v49 }
  0x18   : > { %1586 = vmatprep.subr.msk.bf16.mxu1 %vm681_vm3, %v1622_v50 }
  0x19   : > { %806 = vrot.lane.b32.xlu1 %v1620_v4, %s1691_s14 }
  0x1b   : > { %1531 = vmatpush3.bf16.msra.mxu1 %v683_v51  ;;  %v530_v51 = vld [vmem:[%s497_s13] sm:$0xff] }
  0x1c   : > { %1523 = vmatpush3.bf16.xpose.msra.mxu0 %v577_v5 }
  0x23   : > { %1525 = vmatmul.mubr.msk.bf16.vlgmr.msra.gmra.mrb[0].mxu0 %vm566_vm0, %v1620_v4 }
  0x85   : > { %v809_v6 = vpop.permute.xlu0 %808 }
  0x86   : > { %v819_v7 = vsel %vm566_vm0, %v809_v6, 0  ;;  %1587 = vmatprep.subr.msk.bf16.mxu0 %vm566_vm0, %v809_v6 }
  0x87   : > { %1543 = vmatpush3.bf16.xpose.msra.mxu0 %v819_v7  ;;  %v805_v8 = vpop.permute.xlu1 %804 }
  0x88   : > { %1546 = vmatprep.mubr.msk.bf16.mxu0 %vm566_vm0, %v805_v8 }
  0x89   : > { %v811_v9 = vpop.permute.xlu0 %810 }
  0x8a   : > { %1588 = vmatprep.subr.msk.bf16.mxu0 %vm566_vm0, %v811_v9  ;;  %v822_v10 = vsel %vm566_vm0, %v811_v9, 0 }
  0x8b   : > { %v807_v11 = vpop.permute.xlu1 %806 }
  0x8f   : > { %1545 = vmatpush3.bf16.xpose.msra.mxu0 %v822_v10 }
  0x96   : > { %1547 = vmatmul.mubr.msk.bf16.vlgmr.msra.gmra.mrb[4].mxu0 %vm566_vm0, %v807_v11 }
  0xf6   : > { %v1526_v14 = vpop.f32.mrb[0].mxu0 }
  0xf7   : > { %v613_v15 = vpop.f32.mrb[1].mxu0  ;;  %v629_v20 = vsel %vm548_vm1, %v1526_v14, -1e+30  ;;  %v1623_v14 = vld [vmem:[%s1929_s4] sm:$0xff]  }
  0xf8   : > { %v627_v16 = vsel %vm548_vm1, %v613_v15, -1e+30  ;;  %v1527_v17 = vpop.f32.mrb[2].mxu0  ;;  %v637_v23 = vsel %vm630_vm2, %v629_v20, -inf  ;;  %1536 = vmatprep.subr.bf16.mxu1 %v1623_v14 }
  0xf9   : > { %v616_v18 = vpop.f32.mrb[3].mxu0  ;;  %v631_v19 = vsel %vm630_vm2, %v627_v16, -inf }
  0xfa   : > { %v628_v21 = vsel %vm548_vm1, %v616_v18, -1e+30  ;;  %632 = vmax.xlane.f32.xlu0 %v631_v19 }
  0xfb   : > { %v634_v22 = vsel %vm630_vm2, %v628_v21, -inf }
  0xfc   : > { %635 = vmax.xlane.f32.xlu1 %v634_v22 }
  0xfe   : > { %638 = vmax.xlane.f32.xlu0 %v637_v23 }
 0x169   : > { %v1548_v24 = vpop.f32.mrb[4].mxu0 }
 0x16a   : > { %v858_v25 = vpop.f32.mrb[5].mxu0  ;;  %v874_v46 = vsel %vm548_vm1, %v1548_v24, -1e+30 }
 0x16b   : > { %v1549_v26 = vpop.f32.mrb[6].mxu0  ;;  %v872_v40 = vsel %vm548_vm1, %v858_v25, -1e+30  ;;  %v881_v48 = vsel %vm630_vm2, %v874_v46, -inf }
 0x16c   : > { %v861_v27 = vpop.f32.mrb[7].mxu0  ;;  %v875_v45 = vsel %vm630_vm2, %v872_v40, -inf }
 0x16d   : > { %v873_v43 = vsel %vm548_vm1, %v861_v27, -1e+30 }
 0x16e   : > { %v878_v47 = vsel %vm630_vm2, %v873_v43, -inf }
 0x187   : > { %v633_v28 = vpop.xlane.xlu0 %632 }
 0x188   : > { %v640_v29 = vsub.f32 %v627_v16, %v633_v28 }
 0x189   : > { %v636_v30 = vpop.xlane.xlu1 %635 }
 0x18a   : > { %v643_v31 = vmul.f32 1.442695, %v640_v29  ;;  %v641_v32 = vsub.f32 %v628_v21, %v636_v30 }
 0x18b   : > { %v639_v33 = vpop.xlane.xlu0 %638 }
 0x18c   : > { %1631 = vpow2.f32 %v643_v31  ;;  %v645_v34 = vmul.f32 1.442695, %v641_v32  ;;  %v642_v35 = vsub.f32 %v629_v20, %v639_v33 }
 0x18e   : > { %1633 = vpow2.f32 %v645_v34  ;;  %v647_v36 = vmul.f32 1.442695, %v642_v35  ;;  %v1624_v35 = vld [vmem:[%s1929_s4 + $0x8] sm:$0xff]  }
 0x190   : > { %1635 = vpow2.f32 %v647_v36 }
 0x196   : > { %v1632_v37 = vpop.eup %1631 }
 0x197   : > { %v649_v38 = vsel %vm630_vm2, %v1632_v37, 0.0 }
 0x198   : > { %v1634_v39 = vpop.eup %1633  ;;  %650 = vadd.xlane.f32.xlu0 %v649_v38 }
 0x199   : > { %v652_v41 = vsel %vm630_vm2, %v1634_v39, 0.0 }
 0x19a   : > { %v1636_v42 = vpop.eup %1635  ;;  %653 = vadd.xlane.f32.xlu1 %v652_v41 }
 0x19b   : > { %v655_v44 = vsel %vm630_vm2, %v1636_v42, 0.0 }
 0x19c   : > { %656 = vadd.xlane.f32.xlu0 %v655_v44 }
 0x19e   : > { %876 = vmax.xlane.f32.xlu1 %v875_v45 }
 0x1a0   : > { %879 = vmax.xlane.f32.xlu0 %v878_v47 }
 0x1a2   : > { %882 = vmax.xlane.f32.xlu1 %v881_v48 }
 0x225   : > { %v651_v52 = vpop.xlane.xlu0 %650 }
 0x226   : > { %1637 = vrcp.f32 %v651_v52 }
 0x227   : > { %v654_v53 = vpop.xlane.xlu1 %653 }
 0x228   : > { %1639 = vrcp.f32 %v654_v53 }
 0x229   : > { %v657_v54 = vpop.xlane.xlu0 %656 }
 0x22a   : > { %1641 = vrcp.f32 %v657_v54 }
 0x22b   : > { %v877_v55 = vpop.xlane.xlu1 %876 }
 0x22c   : > { %v884_v57 = vsub.f32 %v872_v40, %v877_v55 }
 0x22d   : > { %v880_v56 = vpop.xlane.xlu0 %879 }
 0x22e   : > { %v885_v58 = vsub.f32 %v873_v43, %v880_v56  ;;  %v887_v0 = vmul.f32 1.442695, %v884_v57  ;;  %v532_v56 = vld [vmem:[%s497_s13 + $0x10] sm:$0xff]  ;;  %v531_v57 = vld [vmem:[%s497_s13 + $0x8] sm:$0xff] }
 0x22f   : > { %v883_v59 = vpop.xlane.xlu1 %882 }
 0x230   : > { %v1638_v60 = vpop.eup %1637  ;;  %v889_v61 = vmul.f32 1.442695, %v885_v58  ;;  %v886_v62 = vsub.f32 %v874_v46, %v883_v59  ;;  %v1464_v46 = vld [vmem:[%s1930_s5] ss:$0 sm:$0xff] }
 0x231   : > { %v661_v2 = vmul.f32 %v1638_v60, %v1632_v37 }
 0x232   : > { %v1640_v63 = vpop.eup %1639  ;;  %1643 = vpow2.f32 %v889_v61  ;;  %v891_v1 = vmul.f32 1.442695, %v886_v62 }
 0x233   : > { %v662_v3 = vmul.f32 %v1640_v63, %v1634_v39 }
 0x234   : > { %v1642_v4 = vpop.eup %1641  ;;  %1645 = vpow2.f32 %v891_v1 }
 0x235   : > { %v664_v5 = vpack.c.bf16 %v662_v3, %v661_v2  ;;  %v663_v6 = vmul.f32 %v1642_v4, %v1636_v42  ;;  %1647 = vpow2.f32 %v887_v0 }
 0x237   : > { %1532 = vmatprep.mubr.msk.bf16.mxu1 %vm630_vm2, %v664_v5  ;;  %v665_v7 = vpack.c.bf16 %v663_v6, %v663_v6 }
 0x239   : > { %1533 = vmatmul.mubr.msk.bf16.vlgmr.msra.gmra.mrb[0].mxu1 %vm630_vm2, %v665_v7 }
 0x23a   : > { %1537 = vmatpush3.bf16.msra.mxu1 %v1623_v14 }
 0x23c   : > { %v1644_v8 = vpop.eup %1643 }
 0x23d   : > { %v896_v9 = vsel %vm630_vm2, %v1644_v8, 0.0 }
 0x23e   : > { %v1646_v10 = vpop.eup %1645  ;;  %897 = vadd.xlane.f32.xlu1 %v896_v9 }
 0x23f   : > { %v899_v11 = vsel %vm630_vm2, %v1646_v10, 0.0  ;;  %v1648_v12 = vpop.eup %1647 }
 0x240   : > { %900 = vadd.xlane.f32.xlu0 %v899_v11  ;;  %v893_v13 = vsel %vm630_vm2, %v1648_v12, 0.0 }
 0x244   : > { %894 = vadd.xlane.f32.xlu0 %v893_v13 }
 0x24f   : > { %910 = vrot.lane.b32.xlu1 %v1621_v49, %s1691_s14 }
 0x25a   : > { %912 = vrot.lane.b32.xlu0 %v1622_v50, %s1691_s14 }
 0x2cb   : > { %v898_v15 = vpop.xlane.xlu1 %897 }
 0x2cd   : > { %v901_v17 = vpop.xlane.xlu0 %900 }
 0x2cf   : > { %v911_v16 = vpop.permute.xlu1 %910 }
 0x2d0   : > { %1550 = vmatprep.subr.bf16.mxu1 %v911_v16 }
 0x2d1   : > { %v895_v18 = vpop.xlane.xlu0 %894 }
 0x2d2   : > { %1649 = vrcp.f32 %v895_v18  ;;  %v1626_v18 = vld [vmem:[%s1933_s8 + $0x8] sm:$0xff]  }
 0x2d3   : > { %1651 = vrcp.f32 %v898_v15 }
 0x2d4   : > { %1653 = vrcp.f32 %v901_v17  ;;  %v1625_v17 = vld [vmem:[%s1933_s8] sm:$0xff]  }
 0x2d5   : > { %v913_v31 = vpop.permute.xlu0 %912  ;;  %1564 = vmatprep.subr.bf16.mxu0 %v1625_v17 }
 0x2d6   : > { %v922_v33 = vsel %vm681_vm3, %v913_v31, 0  ;;  %1565 = vmatpush3.bf16.msra.mxu0 %v1625_v17 }
 0x2d7   : > { %1566 = vmatprep.subr.bf16.mxu0 %v1626_v18 }
 0x2da   : > { %1567 = vmatpush3.bf16.msra.mxu0 %v1626_v18 }
 0x2dc   : > { %v1650_v19 = vpop.eup %1649 }
 0x2dd   : > { %v1652_v21 = vpop.eup %1651  ;;  %v905_v24 = vmul.f32 %v1650_v19, %v1648_v12 }
 0x2de   : > { %v906_v27 = vmul.f32 %v1652_v21, %v1644_v8  ;;  %v1654_v29 = vpop.eup %1653 }
 0x2df   : > { %v907_v32 = vmul.f32 %v1654_v29, %v1646_v10  ;;  %v1472_v29 = vld [vmem:[%s1931_s6] ss:$0 sm:$0xff] }
 0x2e0   : > { %v908_v30 = vpack.c.bf16 %v906_v27, %v905_v24 }
 0x2e1   : > { %v909_v34 = vpack.c.bf16 %v907_v32, %v907_v32 }
 0x30c   : > { %v1534_v20 = vpop.f32.mrb[0].mxu1 }
 0x30d   : > { %v719_v22 = vpop.f32.mrb[1].mxu1  ;;  %v734_v28 = vpack.c.bf16 %v1534_v20, %v1534_v20 }
 0x30e   : > { %v1535_v23 = vpop.f32.mrb[2].mxu1 }
 0x30f   : > { %v722_v25 = vpop.f32.mrb[3].mxu1 }
 0x310   : > { %v733_v26 = vpack.c.bf16 %v722_v25, %v719_v22 }
 0x312   : > { %1538 = vmatprep.mubr.msk.bf16.mxu1 %vm566_vm0, %v733_v26 }
 0x313   : > { %1539 = vmatmul.mubr.msk.bf16.vlgmr.msra.gmra.mrb[4].mxu1 %vm566_vm0, %v734_v28 }
 0x314   : > { %1551 = vmatpush3.bf16.msra.mxu1 %v911_v16  ;;  %1554 = vmatprep.mubr.msk.bf16.mxu1 %vm630_vm2, %v908_v30 }
 0x315   : > { %1589 = vmatprep.subr.msk.bf16.mxu1 %vm681_vm3, %v913_v31 }
 0x318   : > { %1553 = vmatpush3.bf16.msra.mxu1 %v922_v33 }
 0x319   : > { %1558 = vmatprep.subr.bf16.mxu1 %v1624_v35 }
 0x31b   : > { %1555 = vmatmul.mubr.msk.bf16.vlgmr.msra.gmra.mrb[8].mxu1 %vm630_vm2, %v909_v34 }
 0x31c   : > { %1559 = vmatpush3.bf16.msra.mxu1 %v1624_v35  ;;  %v1473_v35 = vld [vmem:[%s1932_s7] ss:$0 sm:$0xff] }
 0x3e6   : > { %v1540_v36 = vpop.f32.mrb[4].mxu1 }
 0x3e7   : > { %v781_v37 = vpop.f32.mrb[5].mxu1  ;;  %v803_v47 = vadd.f32 %v1540_v36, %v1464_v46 }
 0x3e8   : > { %v1541_v38 = vpop.f32.mrb[6].mxu1  ;;  %v801_v48 = vadd.f32 %v1464_v46, %v781_v37 }
 0x3e9   : > { %v784_v39 = vpop.f32.mrb[7].mxu1 }
 0x3ea   : > { %v802_v53 = vadd.f32 %v1464_v46, %v784_v39  ;;  %v1629_v46 = vld [vmem:[%s1935_s10 + $0x10] sm:$0xff]  }
 0x3ee   : > { %v1556_v40 = vpop.f32.mrb[8].mxu1 }
 0x3ef   : > { %v958_v41 = vpop.f32.mrb[9].mxu1  ;;  %v973_v45 = vpack.c.bf16 %v1556_v40, %v1556_v40 }
 0x3f0   : > { %v1557_v42 = vpop.f32.mrb[10].mxu1 }
 0x3f1   : > { %v961_v43 = vpop.f32.mrb[11].mxu1 }
 0x3f2   : > { %v972_v44 = vpack.c.bf16 %v961_v43, %v958_v41 }
 0x3f4   : > { %1560 = vmatprep.mubr.msk.bf16.mxu1 %vm566_vm0, %v972_v44  ;;  %v1627_v44 = vld [vmem:[%s1935_s10] sm:$0xff]  }
 0x3f5   : > { %1561 = vmatmul.mubr.msk.bf16.vlgmr.msra.gmra.mrb[12].mxu1 %vm566_vm0, %v973_v45  ;;  %v1628_v45 = vld [vmem:[%s1935_s10 + $0x8] sm:$0xff]   ;;  %1572 = vmatprep.subr.bf16.mxu1 %v1627_v44 }
 0x3f6   : > { %1573 = vmatpush3.bf16.msra.mxu1 %v1627_v44 }
 0x3f7   : > { %1574 = vmatprep.subr.bf16.mxu1 %v1628_v45 }
 0x3fa   : > { %1575 = vmatpush3.bf16.msra.mxu1 %v1628_v45 }
 0x3fb   : > { %1576 = vmatprep.subr.bf16.mxu1 %v1629_v46 }
 0x3fe   : > { %1577 = vmatpush3.bf16.msra.mxu1 %v1629_v46 }
 0x4c8   : > { %v1562_v49 = vpop.f32.mrb[12].mxu1 }
 0x4c9   : > { %v1036_v50 = vadd.f32 %v1562_v49, %v803_v47  ;;  %v1020_v52 = vpop.f32.mrb[13].mxu1  ;;  %v1630_v47 = vld [vmem:[%s1935_s10 + $0x18] sm:$0xff]  }
 0x4ca   : > { %v1034_v54 = vadd.f32 %v1020_v52, %v801_v48  ;;  %v1563_v55 = vpop.f32.mrb[14].mxu1  ;;  %1578 = vmatprep.subr.bf16.mxu1 %v1630_v47  ;;  %v1474_v48 = vld [vmem:[%s1934_s9] ss:$0 sm:$0xff] }
 0x4cb   : > { %v1023_v58 = vpop.f32.mrb[15].mxu1  ;;  %v1857_v61 = vadd.f32 %v1036_v50, %v532_v56  ;;  %1579 = vmatpush3.bf16.msra.mxu1 %v1630_v47 }
 0x4cc   : > { %v1855_v59 = vadd.f32 %v1034_v54, %v530_v51  ;;  %v1035_v60 = vadd.f32 %v1023_v58, %v802_v53 }
 0x4cd   : > { %v1049_v1 = vsel %vm1042_vm4, %v1857_v61, 0.0 }
 0x4ce   : > { %v1859_v62 = vadd.f32 %v1035_v60, %v531_v57  ;;  %v1043_v63 = vsel %vm1042_vm4, %v1855_v59, 0.0 }
 0x4cf   : > { %1044 = vadd.xlane.f32.xlu1 %v1043_v63 }
 0x4d0   : > { %v1046_v0 = vsel %vm1042_vm4, %v1859_v62, 0.0 }
 0x4d1   : > { %1047 = vadd.xlane.f32.xlu0 %v1046_v0 }
 0x4d3   : > { %1050 = vadd.xlane.f32.xlu1 %v1049_v1 }
 0x55c   : > { %v1045_v2 = vpop.xlane.xlu1 %1044 }
 0x55d   : > { %v1053_v3 = vmul.f32 0.03125, %v1045_v2 }
 0x55e   : > { %v1048_v4 = vpop.xlane.xlu0 %1047 }
 0x55f   : > { %v1056_v5 = vsub.f32 %v1855_v59, %v1053_v3  ;;  %v1054_v6 = vmul.f32 0.03125, %v1048_v4 }
 0x560   : > { %v1051_v7 = vpop.xlane.xlu1 %1050 }
 0x561   : > { %v1057_v8 = vsub.f32 %v1859_v62, %v1054_v6  ;;  %v1055_v9 = vmul.f32 0.03125, %v1051_v7  ;;  %v1059_v10 = vmul.f32 %v1056_v5, %v1056_v5 }
 0x563   : > { %v1058_v11 = vsub.f32 %v1857_v61, %v1055_v9  ;;  %v1062_v12 = vsel %vm1042_vm4, %v1059_v10, 0.0  ;;  %v1060_v13 = vmul.f32 %v1057_v8, %v1057_v8 }
 0x564   : > { %1063 = vadd.xlane.f32.xlu0 %v1062_v12 }
 0x565   : > { %v1065_v14 = vsel %vm1042_vm4, %v1060_v13, 0.0  ;;  %v1061_v15 = vmul.f32 %v1058_v11, %v1058_v11 }
 0x566   : > { %1066 = vadd.xlane.f32.xlu1 %v1065_v14 }
 0x567   : > { %v1068_v16 = vsel %vm1042_vm4, %v1061_v15, 0.0 }
 0x568   : > { %1069 = vadd.xlane.f32.xlu0 %v1068_v16 }
 0x5f1   : > { %v1064_v19 = vpop.xlane.xlu0 %1063 }
 0x5f2   : > { %v1071_v20 = vmul.f32 0.03125, %v1064_v19 }
 0x5f3   : > { %v1067_v21 = vpop.xlane.xlu1 %1066 }
 0x5f4   : > { %v1074_v22 = vadd.f32 1e-05, %v1071_v20  ;;  %v1072_v23 = vmul.f32 0.03125, %v1067_v21 }
 0x5f5   : > { %v1070_v24 = vpop.xlane.xlu0 %1069 }
 0x5f6   : > { %1655 = vrsqrt.f32 %v1074_v22  ;;  %v1075_v25 = vadd.f32 1e-05, %v1072_v23  ;;  %v1073_v26 = vmul.f32 0.03125, %v1070_v24  ;;  %v1479_v24 = vld [vmem:[%s1936_s11] ss:$0 sm:$0xff] }
 0x5f8   : > { %1657 = vrsqrt.f32 %v1075_v25  ;;  %v1076_v27 = vadd.f32 1e-05, %v1073_v26  ;;  %v1218_v25 = vadd.f32 %v1479_v24, %v1857_v61 }
 0x5fa   : > { %1659 = vrsqrt.f32 %v1076_v27  ;;  %v1216_v27 = vadd.f32 %v1479_v24, %v1855_v59 }
 0x600   : > { %v1656_v28 = vpop.eup %1655 }
 0x601   : > { %v1080_v30 = vmul.f32 %v1656_v28, %v1056_v5 }
 0x602   : > { %v1658_v31 = vpop.eup %1657 }
 0x603   : > { %v1081_v32 = vmul.f32 %v1658_v31, %v1057_v8  ;;  %v1089_v33 = vmul.f32 %v1472_v29, %v1080_v30 }
 0x604   : > { %v1660_v34 = vpop.eup %1659 }
 0x605   : > { %v1082_v36 = vmul.f32 %v1660_v34, %v1058_v11  ;;  %v1090_v37 = vmul.f32 %v1472_v29, %v1081_v32  ;;  %v1098_v39 = vadd.f32 %v1473_v35, %v1089_v33  ;;  %v1217_v32 = vadd.f32 %v1479_v24, %v1859_v62 }
 0x607   : > { %v1091_v38 = vmul.f32 %v1472_v29, %v1082_v36  ;;  %v1099_v40 = vadd.f32 %v1473_v35, %v1090_v37 }
 0x609   : > { %v1101_v41 = vpack.c.bf16 %v1099_v40, %v1098_v39  ;;  %v1100_v42 = vadd.f32 %v1473_v35, %v1091_v38 }
 0x60b   : > { %1568 = vmatprep.mubr.msk.bf16.mxu0 %vm1042_vm4, %v1101_v41  ;;  %v1102_v43 = vpack.c.bf16 %v1100_v42, %v1100_v42 }
 0x60d   : > { %1569 = vmatmul.mubr.msk.bf16.vlgmr.msra.gmra.mrb[8].mxu0 %vm1042_vm4, %v1102_v43 }
 0x6e0   : > { %v1570_v49 = vpop.f32.mrb[8].mxu0 }
 0x6e1   : > { %v1175_v50 = vadd.f32 %v1570_v49, %v1474_v48  ;;  %v1166_v51 = vpop.f32.mrb[9].mxu0 }
 0x6e2   : > { %v1167_v52 = vadd.f32 %v1474_v48, %v1166_v51  ;;  %v1571_v53 = vpop.f32.mrb[10].mxu0 }
 0x6e3   : > { %v1185_v54 = vmul.f32 0.044715, %v1175_v50  ;;  %v1169_v55 = vpop.f32.mrb[11].mxu0  ;;  %v1182_v15 = vmul.f32 0.5, %v1175_v50 }
 0x6e4   : > { %v1183_v56 = vmul.f32 0.044715, %v1167_v52  ;;  %v1170_v57 = vadd.f32 %v1474_v48, %v1169_v55  ;;  %v1180_v16 = vmul.f32 0.5, %v1167_v52 }
 0x6e5   : > { %v1188_v58 = vmul.f32 %v1185_v54, %v1175_v50 }
 0x6e6   : > { %v1186_v60 = vmul.f32 %v1183_v56, %v1167_v52  ;;  %v1184_v63 = vmul.f32 0.044715, %v1170_v57  ;;  %v1181_v17 = vmul.f32 0.5, %v1170_v57 }
 0x6e7   : > { %v1191_v0 = vmul.f32 %v1188_v58, %v1175_v50 }
 0x6e8   : > { %v1189_v1 = vmul.f32 %v1186_v60, %v1167_v52  ;;  %v1187_v2 = vmul.f32 %v1184_v63, %v1170_v57 }
 0x6e9   : > { %v1194_v3 = vadd.f32 %v1191_v0, %v1175_v50 }
 0x6ea   : > { %v1192_v4 = vadd.f32 %v1189_v1, %v1167_v52  ;;  %v1190_v5 = vmul.f32 %v1187_v2, %v1170_v57 }
 0x6eb   : > { %v1197_v6 = vmul.f32 0.7978846, %v1194_v3 }
 0x6ec   : > { %v1195_v7 = vmul.f32 0.7978846, %v1192_v4  ;;  %v1193_v8 = vadd.f32 %v1190_v5, %v1170_v57 }
 0x6ed   : > { %1661 = vtanh.f32 %v1197_v6 }
 0x6ee   : > { %1663 = vtanh.f32 %v1195_v7  ;;  %v1196_v9 = vmul.f32 0.7978846, %v1193_v8 }
 0x6f0   : > { %1665 = vtanh.f32 %v1196_v9 }
 0x6f7   : > { %v1662_v10 = vpop.eup %1661 }
 0x6f8   : > { %v1664_v11 = vpop.eup %1663  ;;  %v1203_v12 = vadd.f32 1.0, %v1662_v10 }
 0x6f9   : > { %v1201_v13 = vadd.f32 1.0, %v1664_v11 }
 0x6fa   : > { %v1666_v14 = vpop.eup %1665  ;;  %v1206_v19 = vmul.f32 %v1203_v12, %v1182_v15 }
 0x6fb   : > { %v1202_v18 = vadd.f32 1.0, %v1666_v14  ;;  %v1204_v20 = vmul.f32 %v1201_v13, %v1180_v16 }
 0x6fc   : > { %v1208_v23 = vpack.c.bf16 %v1206_v19, %v1206_v19 }
 0x6fd   : > { %v1205_v21 = vmul.f32 %v1202_v18, %v1181_v17 }
 0x6ff   : > { %v1207_v22 = vpack.c.bf16 %v1205_v21, %v1204_v20 }
 0x701   : > { %1580 = vmatprep.mubr.msk.bf16.mxu1 %vm1251_vm5, %v1207_v22 }
 0x702   : > { %1581 = vmatmul.mubr.msk.bf16.vlgmr.msra.gmra.mrb[16].mxu1 %vm1251_vm5, %v1208_v23 }
 0x7d5   : > { %v1582_v26 = vpop.f32.mrb[16].mxu1 }
 0x7d6   : > { %v1308_v28 = vadd.f32 %v1582_v26, %v1218_v25  ;;  %v1292_v29 = vpop.f32.mrb[17].mxu1 }
 0x7d7   : > { %v1306_v30 = vadd.f32 %v1292_v29, %v1216_v27  ;;  %v1583_v31 = vpop.f32.mrb[18].mxu1 }
 0x7d8   : > { %1311 = vst.msk [vmem:[%s527_s28 + $0x10] sm:$0xff] %vm1042_vm4, %v1308_v28  ;;  %v1295_v33 = vpop.f32.mrb[19].mxu1 }
 0x7d9   : > { %1309 = vst.msk [vmem:[%s527_s28] sm:$0xff] %vm1042_vm4, %v1306_v30  ;;  %v1307_v61 = vadd.f32 %v1295_v33, %v1217_v32 }
 0x7db   : > { %1310 = vst.msk [vmem:[%s527_s28 + $0x8] sm:$0xff] %vm1042_vm4, %v1307_v61 }
 0x7dc PF: > { %s22_s23 = sadd.s32 1, %s1689_s23   ;;  %s1938_s21 = smov %s1685_s22 }
 0x7dd   : > { %p19_p5 = scmp.ge.s32.totalorder %s22_s23, 4   ;;  %s1939_s22 = smov %s1941_s24 }
 0x7df   :  { %21 = sbr.rel (!%p19_p5) target bundleno = 2 (0x2), region = 107 }

</bundles_post_ra>
